<compile_context>
chip_gen: v6e
topology: v6e:2x2x1
jax: 0.10.0
libtpu: 0.0.40
codegen_flags: <defaults>
</compile_context>

<pallas_src>
import functools

import jax
import jax.numpy as jnp
from jax.experimental import pallas as pl
from jax.experimental.pallas import tpu as pltpu


# ----------------------------------------------------------------------------- kernels

def _conv3x3_in_lrelu_kernel(x_ref, w_ref, b_ref, o_ref, *, width, hw):
    # x_ref: (1, 3*Cin, (H+2)*W)  bf16  kx-unrolled im2col (channels-first, flat spatial)
    # w_ref: (3, Co, 3*Cin)       bf16  per-ky weight matrix (columns = kx*Cin + c)
    # b_ref: (Co, 1)              f32
    # o_ref: (1, Co, H*W)
    x = x_ref[0]                                         # (3Cin, (H+2)*W)
    # ky tap == contiguous window [ky*W, ky*W + H*W) of the flattened padded rows.
    acc = jnp.dot(w_ref[0], x[:, 0:hw], preferred_element_type=jnp.float32)
    for ky in (1, 2):                                    # static unroll, f32 accumulation
        acc = acc + jnp.dot(w_ref[ky], x[:, ky * width:ky * width + hw],
                            preferred_element_type=jnp.float32)
    acc = acc + b_ref[...]                               # conv bias (f32)
    # InstanceNorm2d (per-sample, per-channel over H*W on the lane axis, biased var)
    mean = jnp.mean(acc, axis=1, keepdims=True)
    var = jnp.mean(jnp.square(acc - mean), axis=1, keepdims=True)
    y = (acc - mean) * jax.lax.rsqrt(var + 1e-5)
    # LeakyReLU(0.01)
    o_ref[0] = jnp.where(y >= 0.0, y, 0.01 * y).astype(o_ref.dtype)


def _matmul_bias_kernel(x_ref, w_ref, b_ref, o_ref):
    # x_ref: (1, Cin, M) bf16, w_ref: (Cw, Cin) bf16, b_ref: (Cw, 1) f32, o_ref: (1, Cw, M)
    y = jnp.dot(w_ref[...], x_ref[0], preferred_element_type=jnp.float32)
    o_ref[0] = (y + b_ref[...]).astype(o_ref.dtype)


# ----------------------------------------------------------------------------- wrappers

def conv3x3_instancenorm_lrelu(sources, w_oihw, b, *, out_dtype=jnp.float32):
    """Conv2d(k=3, SAME) + InstanceNorm2d(eps=1e-5, no affine) + LeakyReLU(0.01).

    `sources` is a list of NCHW tensors whose channels are (virtually) concatenated —
    the concat is folded into the single im2col concatenate below.
    w_oihw: (Co, Cin, 3, 3) with Cin == sum of source channels.
    """
    N, _, H, W = sources[0].shape
    Cin = sum(int(s.shape[1]) for s in sources)
    Co = w_oihw.shape[0]
    Hp = H + 2
    hw = H * W

    # kx-unrolled im2col, channels-first, bf16.  One XLA concatenate materialises
    # (kx-shifts x [skip, up]) at ~3.2x the input volume (vs 9x f32 previously).
    pads = [jnp.pad(s, ((0, 0), (0, 0), (1, 1), (1, 1))).astype(jnp.bfloat16)
            for s in sources]
    pieces = [p[:, :, :, kx:kx + W] for kx in range(3) for p in pads]
    xc = jnp.concatenate(pieces, axis=1).reshape(N, 3 * Cin, Hp * W)

    # per-ky weight matrices: w[ky][o, kx*Cin + c] = w_oihw[o, c, ky, kx]
    w = jnp.transpose(w_oihw, (2, 3, 1, 0)).reshape(3, 3 * Cin, Co)
    w = jnp.transpose(w, (0, 2, 1)).astype(jnp.bfloat16)          # (3, Co, 3Cin)

    out = pl.pallas_call(
        functools.partial(_conv3x3_in_lrelu_kernel, width=W, hw=hw),
        out_shape=jax.ShapeDtypeStruct((N, Co, hw), out_dtype),
        grid_spec=pltpu.PrefetchScalarGridSpec(
            num_scalar_prefetch=0,
            grid=(N,),
            in_specs=[
                pl.BlockSpec((1, 3 * Cin, Hp * W), lambda n: (n, 0, 0)),
                pl.BlockSpec((3, Co, 3 * Cin), lambda n: (0, 0, 0)),
                pl.BlockSpec((Co, 1), lambda n: (0, 0)),
            ],
            out_specs=pl.BlockSpec((1, Co, hw), lambda n: (n, 0, 0)),
        ),
        compiler_params=pltpu.CompilerParams(dimension_semantics=("parallel",)),
    )(xc, w, b.reshape(Co, 1).astype(jnp.float32))
    # NOTE: for very large H*W this single-block-per-sample layout must move to
    # spatial tiling + two-pass (sum/sumsq) InstanceNorm to fit v7x VMEM.
    return out.reshape(N, Co, H, W)


def _pointwise_matmul_bias(x, w, b, out_dtype):
    """x: (N, Cin, M) bf16, w: (Cw, Cin) bf16, b: (Cw, 1) f32 -> (N, Cw, M)."""
    N, Cin, M = x.shape
    Cw = w.shape[0]
    return pl.pallas_call(
        _matmul_bias_kernel,
        out_shape=jax.ShapeDtypeStruct((N, Cw, M), out_dtype),
        grid_spec=pltpu.PrefetchScalarGridSpec(
            num_scalar_prefetch=0,
            grid=(N,),
            in_specs=[
                pl.BlockSpec((1, Cin, M), lambda n: (n, 0, 0)),
                pl.BlockSpec((Cw, Cin), lambda n: (0, 0)),
                pl.BlockSpec((Cw, 1), lambda n: (0, 0)),
            ],
            out_specs=pl.BlockSpec((1, Cw, M), lambda n: (n, 0, 0)),
        ),
        compiler_params=pltpu.CompilerParams(dimension_semantics=("parallel",)),
    )(x, w, b.astype(jnp.float32))


def conv_transpose2x2(x_nchw, w_torch, b, *, out_dtype=jnp.bfloat16):
    """ConvTranspose2d(k=2, s=2). w_torch: (Cin, Co, 2, 2). Exact: one tap per output px."""
    N, Cin, H, W = x_nchw.shape
    Co = w_torch.shape[1]
    # rows ordered (dy, dx, co)
    w = jnp.transpose(w_torch, (2, 3, 1, 0)).reshape(4 * Co, Cin).astype(jnp.bfloat16)
    b4 = jnp.tile(b, 4).reshape(4 * Co, 1)
    x = x_nchw.reshape(N, Cin, H * W).astype(jnp.bfloat16)
    y = _pointwise_matmul_bias(x, w, b4, out_dtype)                  # (N, 4Co, HW)
    # pixel interleave (bf16, and fused by XLA into the consumer's im2col concat)
    y = y.reshape(N, 2, 2, Co, H, W).transpose(0, 3, 4, 1, 5, 2)     # (N, Co, H, dy, W, dx)
    return y.reshape(N, Co, 2 * H, 2 * W)


def conv1x1(x_nchw, w_torch, b):
    """Conv2d(k=1). w_torch: (Co, Cin, 1, 1)."""
    N, Cin, H, W = x_nchw.shape
    Co = w_torch.shape[0]
    w = w_torch[:, :, 0, 0].astype(jnp.bfloat16)                     # (Co, Cin)
    x = x_nchw.reshape(N, Cin, H * W).astype(jnp.bfloat16)
    y = _pointwise_matmul_bias(x, w, b.reshape(Co, 1), jnp.float32)
    return y.reshape(N, Co, H, W)


# ----------------------------------------------------------------------------- ST_D forward

def st_d_forward(params, inputs, encoder_outputs, images, *, levels, share_l, wskip):
    """Mirrors ST_D.forward. All tensors are NCHW (PyTorch convention).
    `images` is accepted but unused, exactly like the PyTorch module."""
    del images  # unused by ST_D.forward
    enc_rev = encoder_outputs[::-1]
    outputs = inputs
    decoder_outputs = []
    for i in range(share_l, levels):
        p = params['level%d' % (i + 1)]
        up = conv_transpose2x2(outputs, p['up_w'], p['up_b'])            # bf16 NCHW
        sources = [enc_rev[i], up] if wskip else [up]                    # cat([skip, up])
        mid = conv3x3_instancenorm_lrelu(sources, p['c1_w'], p['c1_b'],
                                         out_dtype=jnp.bfloat16)         # intermediate
        outputs = conv3x3_instancenorm_lrelu([mid], p['c2_w'], p['c2_b'],
                                             out_dtype=jnp.float32)      # user-facing
        decoder_outputs.append(outputs)
    score = conv1x1(outputs, params['score_w'], params['score_b'])
    return decoder_outputs, score


# ----------------------------------------------------------------------------- params

def init_params(key, out_channels, feature_maps, levels, share_l, wskip=True):
    params = {}
    keys = iter(jax.random.split(key, 6 * (levels - share_l) + 2))
    for i in range(share_l, levels):
        cin_up = 2 ** (levels - i) * feature_maps
        cout = 2 ** (levels - i - 1) * feature_maps
        cin_c1 = (2 ** (levels - i) * feature_maps) if wskip else cout
        params['level%d' % (i + 1)] = {
            'up_w': 0.1 * jax.random.normal(next(keys), (cin_up, cout, 2, 2), jnp.float32),
            'up_b': 0.1 * jax.random.normal(next(keys), (cout,), jnp.float32),
            'c1_w': 0.1 * jax.random.normal(next(keys), (cout, cin_c1, 3, 3), jnp.float32),
            'c1_b': 0.1 * jax.random.normal(next(keys), (cout,), jnp.float32),
            'c2_w': 0.1 * jax.random.normal(next(keys), (cout, cout, 3, 3), jnp.float32),
            'c2_b': 0.1 * jax.random.normal(next(keys), (cout,), jnp.float32),
        }
    params['score_w'] = 0.1 * jax.random.normal(next(keys), (out_channels, feature_maps, 1, 1),
                                                jnp.float32)
    params['score_b'] = 0.1 * jax.random.normal(next(keys), (out_channels,), jnp.float32)
    return params


# ----------------------------------------------------------------------------- pure-JAX reference

def _ref_forward(params, inputs, encoder_outputs, levels, share_l, wskip):
    enc_rev = encoder_outputs[::-1]
    out = inputs
    dec = []
    for i in range(share_l, levels):
        p = params['level%d' % (i + 1)]
        up = jnp.einsum('nchw,coij->nohiwj', out, p['up_w'])
        N, Co, H, _, W, _ = up.shape
        up = up.reshape(N, Co, 2 * H, 2 * W) + p['up_b'][None, :, None, None]
        out = jnp.concatenate([enc_rev[i], up], axis=1) if wskip else up
        for wk, bk in ((p['c1_w'], p['c1_b']), (p['c2_w'], p['c2_b'])):
            out = jax.lax.conv_general_dilated(
                out, wk, (1, 1), 'SAME',
                dimension_numbers=('NCHW', 'OIHW', 'NCHW')) + bk[None, :, None, None]
            mean = out.mean(axis=(2, 3), keepdims=True)
            var = ((out - mean) ** 2).mean(axis=(2, 3), keepdims=True)
            out = (out - mean) * jax.lax.rsqrt(var + 1e-5)
            out = jnp.where(out >= 0, out, 0.01 * out)
        dec.append(out)
    sw = params['score_w'][:, :, 0, 0]
    score = jnp.einsum('nchw,oc->nohw', out, sw) + params['score_b'][None, :, None, None]
    return dec, score


# ----------------------------------------------------------------------------- main

if __name__ == "__main__":
    OUT_CH, FM, LEVELS, SHARE_L, WSKIP = 3, 8, 2, 0, True
    N, BASE = 2, 4

    key = jax.random.PRNGKey(0)
    k_par, k_in, k_enc = jax.random.split(key, 3)
    params = init_params(k_par, OUT_CH, FM, LEVELS, SHARE_L, WSKIP)

    # `inputs`: bottleneck features, 2^levels * fm channels at the coarsest resolution.
    inputs = jax.random.normal(k_in, (N, 2 ** LEVELS * FM, BASE, BASE), jnp.float32)
    # encoder_outputs in natural shallow->deep order (the PyTorch forward reverses them).
    encoder_outputs = []
    for j, kj in enumerate(jax.random.split(k_enc, LEVELS)):
        ch = 2 ** j * FM
        sp = BASE * 2 ** (LEVELS - j)
        encoder_outputs.append(jax.random.normal(kj, (N, ch, sp, sp), jnp.float32))
    images = jnp.zeros((N, 3, BASE * 2 ** LEVELS, BASE * 2 ** LEVELS), jnp.float32)  # unused

    fwd = jax.jit(functools.partial(st_d_forward,
                                    levels=LEVELS, share_l=SHARE_L, wskip=WSKIP))
    dec_outs, score = fwd(params, inputs, encoder_outputs, images)
    for d in dec_outs:
        jax.block_until_ready(d)
    jax.block_until_ready(score)

    # correctness check against a pure-JAX f32 reference (kernels use bf16 matmul
    # operands with f32 accumulation, so the tolerance reflects bf16 rounding).
    dec_ref, score_ref = _ref_forward(params, inputs, encoder_outputs, LEVELS, SHARE_L, WSKIP)
    for a, r in zip(dec_outs, dec_ref):
        assert a.shape == r.shape, (a.shape, r.shape)
        assert jnp.allclose(a, r, atol=4e-2, rtol=4e-2), float(jnp.max(jnp.abs(a - r)))
    assert score.shape == score_ref.shape
    assert jnp.allclose(score, score_ref, atol=4e-2, rtol=4e-2), \
        float(jnp.max(jnp.abs(score - score_ref)))

    print("KERNEL_OK")
</pallas_src>

<mosaic_0001>
module attributes {stable_mosaic.version = 11 : i64} {
  func.func @_matmul_bias_kernel(%arg0: i32, %arg1: memref<1x32x16xbf16, #tpu.memory_space<vmem>>, %arg2: memref<64x32xbf16, #tpu.memory_space<vmem>>, %arg3: memref<64x1xf32, #tpu.memory_space<vmem>>, %arg4: memref<1x64x16xbf16, #tpu.memory_space<vmem>>) attributes {dimension_semantics = [#tpu.dimension_semantics<parallel>], iteration_bounds = array<i64: 2>, scalar_prefetch = 0 : i64, scratch_operands = 0 : i64, tpu.core_type = #tpu.core_type<tc>, window_params = [{transform_indices = @transform_0, window_bounds = array<i64: 1, 32, 16>}, {pipeline_mode = #tpu.pipeline_mode<synchronous>, transform_indices = @transform_1, window_bounds = array<i64: 64, 32>}, {pipeline_mode = #tpu.pipeline_mode<synchronous>, transform_indices = @transform_2, window_bounds = array<i64: 64, 1>}, {transform_indices = @transform_3, window_bounds = array<i64: 1, 64, 16>}]} {
    %c0 = arith.constant 0 : index
    %c0_0 = arith.constant 0 : index
    %0 = vector.load %arg2[%c0, %c0_0] : memref<64x32xbf16, #tpu.memory_space<vmem>>, vector<64x32xbf16>
    %c0_1 = arith.constant 0 : index
    %c0_2 = arith.constant 0 : index
    %c0_3 = arith.constant 0 : index
    %1 = vector.load %arg1[%c0_1, %c0_2, %c0_3] : memref<1x32x16xbf16, #tpu.memory_space<vmem>>, vector<1x32x16xbf16>
    %2 = vector.shape_cast %1 : vector<1x32x16xbf16> to vector<32x16xbf16>
    %cst = arith.constant dense<0.000000e+00> : vector<64x16xf32>
    %3 = tpu.matmul %0, %2, %cst {dimension_numbers = #tpu.dot_dimension_numbers<[1], [0], [0], [1], [0, 0, 1, 1], [], []>} : vector<64x32xbf16>, vector<32x16xbf16>, vector<64x16xf32> -> vector<64x16xf32>
    %c0_4 = arith.constant 0 : index
    %c0_5 = arith.constant 0 : index
    %4 = vector.load %arg3[%c0_4, %c0_5] : memref<64x1xf32, #tpu.memory_space<vmem>>, vector<64x1xf32>
    %5 = vector.broadcast %4 : vector<64x1xf32> to vector<64x16xf32>
    %6 = arith.addf %3, %5 : vector<64x16xf32>
    %7 = arith.truncf %6 : vector<64x16xf32> to vector<64x16xbf16>
    %c0_6 = arith.constant 0 : index
    %c0_7 = arith.constant 0 : index
    %c0_8 = arith.constant 0 : index
    %8 = vector.load %arg4[%c0_6, %c0_7, %c0_8] : memref<1x64x16xbf16, #tpu.memory_space<vmem>>, vector<1x64x16xbf16>
    %9 = vector.shape_cast %8 : vector<1x64x16xbf16> to vector<64x16xbf16>
    %10 = vector.shape_cast %7 : vector<64x16xbf16> to vector<1x64x16xbf16>
    tpu.vector_store %arg4[%c0_6, %c0_7, %c0_8], %10 {strides = array<i32>} : memref<1x64x16xbf16, #tpu.memory_space<vmem>>, vector<1x64x16xbf16>,
    return
  }
  func.func @transform_0(%arg0: i32) -> (i32, i32, i32) {
    %c0_i32 = arith.constant 0 : i32
    %c0_i32_0 = arith.constant 0 : i32
    %c0_i32_1 = arith.constant 0 : i32
    return %arg0, %c0_i32, %c0_i32_0 : i32, i32, i32
  }
  func.func @transform_1(%arg0: i32) -> (i32, i32) {
    %c0_i32 = arith.constant 0 : i32
    %c0_i32_0 = arith.constant 0 : i32
    %c0_i32_1 = arith.constant 0 : i32
    return %c0_i32, %c0_i32_0 : i32, i32
  }
  func.func @transform_2(%arg0: i32) -> (i32, i32) {
    %c0_i32 = arith.constant 0 : i32
    %c0_i32_0 = arith.constant 0 : i32
    %c0_i32_1 = arith.constant 0 : i32
    return %c0_i32, %c0_i32_0 : i32, i32
  }
  func.func @transform_3(%arg0: i32) -> (i32, i32, i32) {
    %c0_i32 = arith.constant 0 : i32
    %c0_i32_0 = arith.constant 0 : i32
    %c0_i32_1 = arith.constant 0 : i32
    return %arg0, %c0_i32, %c0_i32_0 : i32, i32, i32
  }
}

module attributes {stable_mosaic.version = 11 : i64} {
  func.func @_conv3x3_in_lrelu_kernel(%arg0: i32, %arg1: memref<1x96x80xbf16, #tpu.memory_space<vmem>>, %arg2: memref<3x16x96xbf16, #tpu.memory_space<vmem>>, %arg3: memref<16x1xf32, #tpu.memory_space<vmem>>, %arg4: memref<1x16x64xbf16, #tpu.memory_space<vmem>>) attributes {dimension_semantics = [#tpu.dimension_semantics<parallel>], iteration_bounds = array<i64: 2>, scalar_prefetch = 0 : i64, scratch_operands = 0 : i64, tpu.core_type = #tpu.core_type<tc>, window_params = [{transform_indices = @transform_0, window_bounds = array<i64: 1, 96, 80>}, {pipeline_mode = #tpu.pipeline_mode<synchronous>, transform_indices = @transform_1, window_bounds = array<i64: 3, 16, 96>}, {pipeline_mode = #tpu.pipeline_mode<synchronous>, transform_indices = @transform_2, window_bounds = array<i64: 16, 1>}, {transform_indices = @transform_3, window_bounds = array<i64: 1, 16, 64>}]} {
    %c0 = arith.constant 0 : index
    %c0_0 = arith.constant 0 : index
    %c0_1 = arith.constant 0 : index
    %0 = vector.load %arg1[%c0, %c0_0, %c0_1] : memref<1x96x80xbf16, #tpu.memory_space<vmem>>, vector<1x96x80xbf16>
    %1 = vector.shape_cast %0 : vector<1x96x80xbf16> to vector<96x80xbf16>
    %c0_2 = arith.constant 0 : index
    %c0_3 = arith.constant 0 : index
    %c0_4 = arith.constant 0 : index
    %2 = vector.load %arg2[%c0_2, %c0_3, %c0_4] : memref<3x16x96xbf16, #tpu.memory_space<vmem>>, vector<1x16x96xbf16>
    %3 = vector.shape_cast %2 : vector<1x16x96xbf16> to vector<16x96xbf16>
    %4 = vector.extract_strided_slice %1 {offsets = [0, 0], sizes = [96, 64], strides = [1, 1]} : vector<96x80xbf16> to vector<96x64xbf16>
    %cst = arith.constant dense<0.000000e+00> : vector<16x64xf32>
    %5 = tpu.matmul %3, %4, %cst {dimension_numbers = #tpu.dot_dimension_numbers<[1], [0], [0], [1], [0, 0, 1, 1], [], []>} : vector<16x96xbf16>, vector<96x64xbf16>, vector<16x64xf32> -> vector<16x64xf32>
    %c1 = arith.constant 1 : index
    %c0_5 = arith.constant 0 : index
    %c0_6 = arith.constant 0 : index
    %6 = vector.load %arg2[%c1, %c0_5, %c0_6] : memref<3x16x96xbf16, #tpu.memory_space<vmem>>, vector<1x16x96xbf16>
    %7 = vector.shape_cast %6 : vector<1x16x96xbf16> to vector<16x96xbf16>
    %8 = vector.extract_strided_slice %1 {offsets = [0, 8], sizes = [96, 64], strides = [1, 1]} : vector<96x80xbf16> to vector<96x64xbf16>
    %cst_7 = arith.constant dense<0.000000e+00> : vector<16x64xf32>
    %9 = tpu.matmul %7, %8, %cst_7 {dimension_numbers = #tpu.dot_dimension_numbers<[1], [0], [0], [1], [0, 0, 1, 1], [], []>} : vector<16x96xbf16>, vector<96x64xbf16>, vector<16x64xf32> -> vector<16x64xf32>
    %10 = arith.addf %5, %9 : vector<16x64xf32>
    %c2 = arith.constant 2 : index
    %c0_8 = arith.constant 0 : index
    %c0_9 = arith.constant 0 : index
    %11 = vector.load %arg2[%c2, %c0_8, %c0_9] : memref<3x16x96xbf16, #tpu.memory_space<vmem>>, vector<1x16x96xbf16>
    %12 = vector.shape_cast %11 : vector<1x16x96xbf16> to vector<16x96xbf16>
    %13 = vector.extract_strided_slice %1 {offsets = [0, 16], sizes = [96, 64], strides = [1, 1]} : vector<96x80xbf16> to vector<96x64xbf16>
    %cst_10 = arith.constant dense<0.000000e+00> : vector<16x64xf32>
    %14 = tpu.matmul %12, %13, %cst_10 {dimension_numbers = #tpu.dot_dimension_numbers<[1], [0], [0], [1], [0, 0, 1, 1], [], []>} : vector<16x96xbf16>, vector<96x64xbf16>, vector<16x64xf32> -> vector<16x64xf32>
    %15 = arith.addf %10, %14 : vector<16x64xf32>
    %c0_11 = arith.constant 0 : index
    %c0_12 = arith.constant 0 : index
    %16 = vector.load %arg3[%c0_11, %c0_12] : memref<16x1xf32, #tpu.memory_space<vmem>>, vector<16x1xf32>
    %17 = vector.broadcast %16 : vector<16x1xf32> to vector<16x64xf32>
    %18 = arith.addf %15, %17 : vector<16x64xf32>
    %cst_13 = arith.constant dense<0.000000e+00> : vector<16xf32>
    %19 = vector.multi_reduction <add>, %18, %cst_13 [1] : vector<16x64xf32> to vector<16xf32>
    %20 = vector.shape_cast %19 : vector<16xf32> to vector<16x1xf32>
    %cst_14 = arith.constant 6.400000e+01 : f32
    %21 = vector.broadcast %cst_14 : f32 to vector<16x1xf32>
    %22 = arith.divf %20, %21 : vector<16x1xf32>
    %23 = vector.broadcast %22 : vector<16x1xf32> to vector<16x64xf32>
    %24 = arith.subf %18, %23 : vector<16x64xf32>
    %25 = arith.mulf %24, %24 : vector<16x64xf32>
    %cst_15 = arith.constant dense<0.000000e+00> : vector<16xf32>
    %26 = vector.multi_reduction <add>, %25, %cst_15 [1] : vector<16x64xf32> to vector<16xf32>
    %27 = vector.shape_cast %26 : vector<16xf32> to vector<16x1xf32>
    %cst_16 = arith.constant 6.400000e+01 : f32
    %28 = vector.broadcast %cst_16 : f32 to vector<16x1xf32>
    %29 = arith.divf %27, %28 : vector<16x1xf32>
    %30 = vector.broadcast %22 : vector<16x1xf32> to vector<16x64xf32>
    %31 = arith.subf %18, %30 : vector<16x64xf32>
    %cst_17 = arith.constant 9.99999974E-6 : f32
    %32 = vector.broadcast %cst_17 : f32 to vector<16x1xf32>
    %33 = arith.addf %29, %32 : vector<16x1xf32>
    %34 = math.rsqrt %33 : vector<16x1xf32>
    %35 = vector.broadcast %34 : vector<16x1xf32> to vector<16x64xf32>
    %36 = arith.mulf %31, %35 : vector<16x64xf32>
    %cst_18 = arith.constant 0.000000e+00 : f32
    %37 = vector.broadcast %cst_18 : f32 to vector<16x64xf32>
    %38 = arith.cmpf oge, %36, %37 : vector<16x64xf32>
    %cst_19 = arith.constant 0.00999999977 : f32
    %39 = vector.broadcast %cst_19 : f32 to vector<16x64xf32>
    %40 = arith.mulf %39, %36 : vector<16x64xf32>
    %41 = arith.select %38, %36, %40 : vector<16x64xi1>, vector<16x64xf32>
    %42 = arith.truncf %41 : vector<16x64xf32> to vector<16x64xbf16>
    %c0_20 = arith.constant 0 : index
    %c0_21 = arith.constant 0 : index
    %c0_22 = arith.constant 0 : index
    %43 = vector.load %arg4[%c0_20, %c0_21, %c0_22] : memref<1x16x64xbf16, #tpu.memory_space<vmem>>, vector<1x16x64xbf16>
    %44 = vector.shape_cast %43 : vector<1x16x64xbf16> to vector<16x64xbf16>
    %45 = vector.shape_cast %42 : vector<16x64xbf16> to vector<1x16x64xbf16>
    tpu.vector_store %arg4[%c0_20, %c0_21, %c0_22], %45 {strides = array<i32>} : memref<1x16x64xbf16, #tpu.memory_space<vmem>>, vector<1x16x64xbf16>,
    return
  }
  func.func @transform_0(%arg0: i32) -> (i32, i32, i32) {
    %c0_i32 = arith.constant 0 : i32
    %c0_i32_0 = arith.constant 0 : i32
    %c0_i32_1 = arith.constant 0 : i32
    return %arg0, %c0_i32, %c0_i32_0 : i32, i32, i32
  }
  func.func @transform_1(%arg0: i32) -> (i32, i32, i32) {
    %c0_i32 = arith.constant 0 : i32
    %c0_i32_0 = arith.constant 0 : i32
    %c0_i32_1 = arith.constant 0 : i32
    %c0_i32_2 = arith.constant 0 : i32
    return %c0_i32, %c0_i32_0, %c0_i32_1 : i32, i32, i32
  }
  func.func @transform_2(%arg0: i32) -> (i32, i32) {
    %c0_i32 = arith.constant 0 : i32
    %c0_i32_0 = arith.constant 0 : i32
    %c0_i32_1 = arith.constant 0 : i32
    return %c0_i32, %c0_i32_0 : i32, i32
  }
  func.func @transform_3(%arg0: i32) -> (i32, i32, i32) {
    %c0_i32 = arith.constant 0 : i32
    %c0_i32_0 = arith.constant 0 : i32
    %c0_i32_1 = arith.constant 0 : i32
    return %arg0, %c0_i32, %c0_i32_0 : i32, i32, i32
  }
}

module attributes {stable_mosaic.version = 11 : i64} {
  func.func @_conv3x3_in_lrelu_kernel(%arg0: i32, %arg1: memref<1x48x80xbf16, #tpu.memory_space<vmem>>, %arg2: memref<3x16x48xbf16, #tpu.memory_space<vmem>>, %arg3: memref<16x1xf32, #tpu.memory_space<vmem>>, %arg4: memref<1x16x64xf32, #tpu.memory_space<vmem>>) attributes {dimension_semantics = [#tpu.dimension_semantics<parallel>], iteration_bounds = array<i64: 2>, scalar_prefetch = 0 : i64, scratch_operands = 0 : i64, tpu.core_type = #tpu.core_type<tc>, window_params = [{transform_indices = @transform_0, window_bounds = array<i64: 1, 48, 80>}, {pipeline_mode = #tpu.pipeline_mode<synchronous>, transform_indices = @transform_1, window_bounds = array<i64: 3, 16, 48>}, {pipeline_mode = #tpu.pipeline_mode<synchronous>, transform_indices = @transform_2, window_bounds = array<i64: 16, 1>}, {transform_indices = @transform_3, window_bounds = array<i64: 1, 16, 64>}]} {
    %c0 = arith.constant 0 : index
    %c0_0 = arith.constant 0 : index
    %c0_1 = arith.constant 0 : index
    %0 = vector.load %arg1[%c0, %c0_0, %c0_1] : memref<1x48x80xbf16, #tpu.memory_space<vmem>>, vector<1x48x80xbf16>
    %1 = vector.shape_cast %0 : vector<1x48x80xbf16> to vector<48x80xbf16>
    %c0_2 = arith.constant 0 : index
    %c0_3 = arith.constant 0 : index
    %c0_4 = arith.constant 0 : index
    %2 = vector.load %arg2[%c0_2, %c0_3, %c0_4] : memref<3x16x48xbf16, #tpu.memory_space<vmem>>, vector<1x16x48xbf16>
    %3 = vector.shape_cast %2 : vector<1x16x48xbf16> to vector<16x48xbf16>
    %4 = vector.extract_strided_slice %1 {offsets = [0, 0], sizes = [48, 64], strides = [1, 1]} : vector<48x80xbf16> to vector<48x64xbf16>
    %cst = arith.constant dense<0.000000e+00> : vector<16x64xf32>
    %5 = tpu.matmul %3, %4, %cst {dimension_numbers = #tpu.dot_dimension_numbers<[1], [0], [0], [1], [0, 0, 1, 1], [], []>} : vector<16x48xbf16>, vector<48x64xbf16>, vector<16x64xf32> -> vector<16x64xf32>
    %c1 = arith.constant 1 : index
    %c0_5 = arith.constant 0 : index
    %c0_6 = arith.constant 0 : index
    %6 = vector.load %arg2[%c1, %c0_5, %c0_6] : memref<3x16x48xbf16, #tpu.memory_space<vmem>>, vector<1x16x48xbf16>
    %7 = vector.shape_cast %6 : vector<1x16x48xbf16> to vector<16x48xbf16>
    %8 = vector.extract_strided_slice %1 {offsets = [0, 8], sizes = [48, 64], strides = [1, 1]} : vector<48x80xbf16> to vector<48x64xbf16>
    %cst_7 = arith.constant dense<0.000000e+00> : vector<16x64xf32>
    %9 = tpu.matmul %7, %8, %cst_7 {dimension_numbers = #tpu.dot_dimension_numbers<[1], [0], [0], [1], [0, 0, 1, 1], [], []>} : vector<16x48xbf16>, vector<48x64xbf16>, vector<16x64xf32> -> vector<16x64xf32>
    %10 = arith.addf %5, %9 : vector<16x64xf32>
    %c2 = arith.constant 2 : index
    %c0_8 = arith.constant 0 : index
    %c0_9 = arith.constant 0 : index
    %11 = vector.load %arg2[%c2, %c0_8, %c0_9] : memref<3x16x48xbf16, #tpu.memory_space<vmem>>, vector<1x16x48xbf16>
    %12 = vector.shape_cast %11 : vector<1x16x48xbf16> to vector<16x48xbf16>
    %13 = vector.extract_strided_slice %1 {offsets = [0, 16], sizes = [48, 64], strides = [1, 1]} : vector<48x80xbf16> to vector<48x64xbf16>
    %cst_10 = arith.constant dense<0.000000e+00> : vector<16x64xf32>
    %14 = tpu.matmul %12, %13, %cst_10 {dimension_numbers = #tpu.dot_dimension_numbers<[1], [0], [0], [1], [0, 0, 1, 1], [], []>} : vector<16x48xbf16>, vector<48x64xbf16>, vector<16x64xf32> -> vector<16x64xf32>
    %15 = arith.addf %10, %14 : vector<16x64xf32>
    %c0_11 = arith.constant 0 : index
    %c0_12 = arith.constant 0 : index
    %16 = vector.load %arg3[%c0_11, %c0_12] : memref<16x1xf32, #tpu.memory_space<vmem>>, vector<16x1xf32>
    %17 = vector.broadcast %16 : vector<16x1xf32> to vector<16x64xf32>
    %18 = arith.addf %15, %17 : vector<16x64xf32>
    %cst_13 = arith.constant dense<0.000000e+00> : vector<16xf32>
    %19 = vector.multi_reduction <add>, %18, %cst_13 [1] : vector<16x64xf32> to vector<16xf32>
    %20 = vector.shape_cast %19 : vector<16xf32> to vector<16x1xf32>
    %cst_14 = arith.constant 6.400000e+01 : f32
    %21 = vector.broadcast %cst_14 : f32 to vector<16x1xf32>
    %22 = arith.divf %20, %21 : vector<16x1xf32>
    %23 = vector.broadcast %22 : vector<16x1xf32> to vector<16x64xf32>
    %24 = arith.subf %18, %23 : vector<16x64xf32>
    %25 = arith.mulf %24, %24 : vector<16x64xf32>
    %cst_15 = arith.constant dense<0.000000e+00> : vector<16xf32>
    %26 = vector.multi_reduction <add>, %25, %cst_15 [1] : vector<16x64xf32> to vector<16xf32>
    %27 = vector.shape_cast %26 : vector<16xf32> to vector<16x1xf32>
    %cst_16 = arith.constant 6.400000e+01 : f32
    %28 = vector.broadcast %cst_16 : f32 to vector<16x1xf32>
    %29 = arith.divf %27, %28 : vector<16x1xf32>
    %30 = vector.broadcast %22 : vector<16x1xf32> to vector<16x64xf32>
    %31 = arith.subf %18, %30 : vector<16x64xf32>
    %cst_17 = arith.constant 9.99999974E-6 : f32
    %32 = vector.broadcast %cst_17 : f32 to vector<16x1xf32>
    %33 = arith.addf %29, %32 : vector<16x1xf32>
    %34 = math.rsqrt %33 : vector<16x1xf32>
    %35 = vector.broadcast %34 : vector<16x1xf32> to vector<16x64xf32>
    %36 = arith.mulf %31, %35 : vector<16x64xf32>
    %cst_18 = arith.constant 0.000000e+00 : f32
    %37 = vector.broadcast %cst_18 : f32 to vector<16x64xf32>
    %38 = arith.cmpf oge, %36, %37 : vector<16x64xf32>
    %cst_19 = arith.constant 0.00999999977 : f32
    %39 = vector.broadcast %cst_19 : f32 to vector<16x64xf32>
    %40 = arith.mulf %39, %36 : vector<16x64xf32>
    %41 = arith.select %38, %36, %40 : vector<16x64xi1>, vector<16x64xf32>
    %c0_20 = arith.constant 0 : index
    %c0_21 = arith.constant 0 : index
    %c0_22 = arith.constant 0 : index
    %42 = vector.load %arg4[%c0_20, %c0_21, %c0_22] : memref<1x16x64xf32, #tpu.memory_space<vmem>>, vector<1x16x64xf32>
    %43 = vector.shape_cast %42 : vector<1x16x64xf32> to vector<16x64xf32>
    %44 = vector.shape_cast %41 : vector<16x64xf32> to vector<1x16x64xf32>
    tpu.vector_store %arg4[%c0_20, %c0_21, %c0_22], %44 {strides = array<i32>} : memref<1x16x64xf32, #tpu.memory_space<vmem>>, vector<1x16x64xf32>,
    return
  }
  func.func @transform_0(%arg0: i32) -> (i32, i32, i32) {
    %c0_i32 = arith.constant 0 : i32
    %c0_i32_0 = arith.constant 0 : i32
    %c0_i32_1 = arith.constant 0 : i32
    return %arg0, %c0_i32, %c0_i32_0 : i32, i32, i32
  }
  func.func @transform_1(%arg0: i32) -> (i32, i32, i32) {
    %c0_i32 = arith.constant 0 : i32
    %c0_i32_0 = arith.constant 0 : i32
    %c0_i32_1 = arith.constant 0 : i32
    %c0_i32_2 = arith.constant 0 : i32
    return %c0_i32, %c0_i32_0, %c0_i32_1 : i32, i32, i32
  }
  func.func @transform_2(%arg0: i32) -> (i32, i32) {
    %c0_i32 = arith.constant 0 : i32
    %c0_i32_0 = arith.constant 0 : i32
    %c0_i32_1 = arith.constant 0 : i32
    return %c0_i32, %c0_i32_0 : i32, i32
  }
  func.func @transform_3(%arg0: i32) -> (i32, i32, i32) {
    %c0_i32 = arith.constant 0 : i32
    %c0_i32_0 = arith.constant 0 : i32
    %c0_i32_1 = arith.constant 0 : i32
    return %arg0, %c0_i32, %c0_i32_0 : i32, i32, i32
  }
}

module attributes {stable_mosaic.version = 11 : i64} {
  func.func @_matmul_bias_kernel(%arg0: i32, %arg1: memref<1x16x64xbf16, #tpu.memory_space<vmem>>, %arg2: memref<32x16xbf16, #tpu.memory_space<vmem>>, %arg3: memref<32x1xf32, #tpu.memory_space<vmem>>, %arg4: memref<1x32x64xbf16, #tpu.memory_space<vmem>>) attributes {dimension_semantics = [#tpu.dimension_semantics<parallel>], iteration_bounds = array<i64: 2>, scalar_prefetch = 0 : i64, scratch_operands = 0 : i64, tpu.core_type = #tpu.core_type<tc>, window_params = [{transform_indices = @transform_0, window_bounds = array<i64: 1, 16, 64>}, {pipeline_mode = #tpu.pipeline_mode<synchronous>, transform_indices = @transform_1, window_bounds = array<i64: 32, 16>}, {pipeline_mode = #tpu.pipeline_mode<synchronous>, transform_indices = @transform_2, window_bounds = array<i64: 32, 1>}, {transform_indices = @transform_3, window_bounds = array<i64: 1, 32, 64>}]} {
    %c0 = arith.constant 0 : index
    %c0_0 = arith.constant 0 : index
    %0 = vector.load %arg2[%c0, %c0_0] : memref<32x16xbf16, #tpu.memory_space<vmem>>, vector<32x16xbf16>
    %c0_1 = arith.constant 0 : index
    %c0_2 = arith.constant 0 : index
    %c0_3 = arith.constant 0 : index
    %1 = vector.load %arg1[%c0_1, %c0_2, %c0_3] : memref<1x16x64xbf16, #tpu.memory_space<vmem>>, vector<1x16x64xbf16>
    %2 = vector.shape_cast %1 : vector<1x16x64xbf16> to vector<16x64xbf16>
    %cst = arith.constant dense<0.000000e+00> : vector<32x64xf32>
    %3 = tpu.matmul %0, %2, %cst {dimension_numbers = #tpu.dot_dimension_numbers<[1], [0], [0], [1], [0, 0, 1, 1], [], []>} : vector<32x16xbf16>, vector<16x64xbf16>, vector<32x64xf32> -> vector<32x64xf32>
    %c0_4 = arith.constant 0 : index
    %c0_5 = arith.constant 0 : index
    %4 = vector.load %arg3[%c0_4, %c0_5] : memref<32x1xf32, #tpu.memory_space<vmem>>, vector<32x1xf32>
    %5 = vector.broadcast %4 : vector<32x1xf32> to vector<32x64xf32>
    %6 = arith.addf %3, %5 : vector<32x64xf32>
    %7 = arith.truncf %6 : vector<32x64xf32> to vector<32x64xbf16>
    %c0_6 = arith.constant 0 : index
    %c0_7 = arith.constant 0 : index
    %c0_8 = arith.constant 0 : index
    %8 = vector.load %arg4[%c0_6, %c0_7, %c0_8] : memref<1x32x64xbf16, #tpu.memory_space<vmem>>, vector<1x32x64xbf16>
    %9 = vector.shape_cast %8 : vector<1x32x64xbf16> to vector<32x64xbf16>
    %10 = vector.shape_cast %7 : vector<32x64xbf16> to vector<1x32x64xbf16>
    tpu.vector_store %arg4[%c0_6, %c0_7, %c0_8], %10 {strides = array<i32>} : memref<1x32x64xbf16, #tpu.memory_space<vmem>>, vector<1x32x64xbf16>,
    return
  }
  func.func @transform_0(%arg0: i32) -> (i32, i32, i32) {
    %c0_i32 = arith.constant 0 : i32
    %c0_i32_0 = arith.constant 0 : i32
    %c0_i32_1 = arith.constant 0 : i32
    return %arg0, %c0_i32, %c0_i32_0 : i32, i32, i32
  }
  func.func @transform_1(%arg0: i32) -> (i32, i32) {
    %c0_i32 = arith.constant 0 : i32
    %c0_i32_0 = arith.constant 0 : i32
    %c0_i32_1 = arith.constant 0 : i32
    return %c0_i32, %c0_i32_0 : i32, i32
  }
  func.func @transform_2(%arg0: i32) -> (i32, i32) {
    %c0_i32 = arith.constant 0 : i32
    %c0_i32_0 = arith.constant 0 : i32
    %c0_i32_1 = arith.constant 0 : i32
    return %c0_i32, %c0_i32_0 : i32, i32
  }
  func.func @transform_3(%arg0: i32) -> (i32, i32, i32) {
    %c0_i32 = arith.constant 0 : i32
    %c0_i32_0 = arith.constant 0 : i32
    %c0_i32_1 = arith.constant 0 : i32
    return %arg0, %c0_i32, %c0_i32_0 : i32, i32, i32
  }
}

module attributes {stable_mosaic.version = 11 : i64} {
  func.func @_conv3x3_in_lrelu_kernel(%arg0: i32, %arg1: memref<1x48x288xbf16, #tpu.memory_space<vmem>>, %arg2: memref<3x8x48xbf16, #tpu.memory_space<vmem>>, %arg3: memref<8x1xf32, #tpu.memory_space<vmem>>, %arg4: memref<1x8x256xbf16, #tpu.memory_space<vmem>>) attributes {dimension_semantics = [#tpu.dimension_semantics<parallel>], iteration_bounds = array<i64: 2>, scalar_prefetch = 0 : i64, scratch_operands = 0 : i64, tpu.core_type = #tpu.core_type<tc>, window_params = [{transform_indices = @transform_0, window_bounds = array<i64: 1, 48, 288>}, {pipeline_mode = #tpu.pipeline_mode<synchronous>, transform_indices = @transform_1, window_bounds = array<i64: 3, 8, 48>}, {pipeline_mode = #tpu.pipeline_mode<synchronous>, transform_indices = @transform_2, window_bounds = array<i64: 8, 1>}, {transform_indices = @transform_3, window_bounds = array<i64: 1, 8, 256>}]} {
    %c0 = arith.constant 0 : index
    %c0_0 = arith.constant 0 : index
    %c0_1 = arith.constant 0 : index
    %0 = vector.load %arg1[%c0, %c0_0, %c0_1] : memref<1x48x288xbf16, #tpu.memory_space<vmem>>, vector<1x48x288xbf16>
    %1 = vector.shape_cast %0 : vector<1x48x288xbf16> to vector<48x288xbf16>
    %c0_2 = arith.constant 0 : index
    %c0_3 = arith.constant 0 : index
    %c0_4 = arith.constant 0 : index
    %2 = vector.load %arg2[%c0_2, %c0_3, %c0_4] : memref<3x8x48xbf16, #tpu.memory_space<vmem>>, vector<1x8x48xbf16>
    %3 = vector.shape_cast %2 : vector<1x8x48xbf16> to vector<8x48xbf16>
    %4 = vector.extract_strided_slice %1 {offsets = [0, 0], sizes = [48, 256], strides = [1, 1]} : vector<48x288xbf16> to vector<48x256xbf16>
    %cst = arith.constant dense<0.000000e+00> : vector<8x256xf32>
    %5 = tpu.matmul %3, %4, %cst {dimension_numbers = #tpu.dot_dimension_numbers<[1], [0], [0], [1], [0, 0, 1, 1], [], []>} : vector<8x48xbf16>, vector<48x256xbf16>, vector<8x256xf32> -> vector<8x256xf32>
    %c1 = arith.constant 1 : index
    %c0_5 = arith.constant 0 : index
    %c0_6 = arith.constant 0 : index
    %6 = vector.load %arg2[%c1, %c0_5, %c0_6] : memref<3x8x48xbf16, #tpu.memory_space<vmem>>, vector<1x8x48xbf16>
    %7 = vector.shape_cast %6 : vector<1x8x48xbf16> to vector<8x48xbf16>
    %8 = vector.extract_strided_slice %1 {offsets = [0, 16], sizes = [48, 256], strides = [1, 1]} : vector<48x288xbf16> to vector<48x256xbf16>
    %cst_7 = arith.constant dense<0.000000e+00> : vector<8x256xf32>
    %9 = tpu.matmul %7, %8, %cst_7 {dimension_numbers = #tpu.dot_dimension_numbers<[1], [0], [0], [1], [0, 0, 1, 1], [], []>} : vector<8x48xbf16>, vector<48x256xbf16>, vector<8x256xf32> -> vector<8x256xf32>
    %10 = arith.addf %5, %9 : vector<8x256xf32>
    %c2 = arith.constant 2 : index
    %c0_8 = arith.constant 0 : index
    %c0_9 = arith.constant 0 : index
    %11 = vector.load %arg2[%c2, %c0_8, %c0_9] : memref<3x8x48xbf16, #tpu.memory_space<vmem>>, vector<1x8x48xbf16>
    %12 = vector.shape_cast %11 : vector<1x8x48xbf16> to vector<8x48xbf16>
    %13 = vector.extract_strided_slice %1 {offsets = [0, 32], sizes = [48, 256], strides = [1, 1]} : vector<48x288xbf16> to vector<48x256xbf16>
    %cst_10 = arith.constant dense<0.000000e+00> : vector<8x256xf32>
    %14 = tpu.matmul %12, %13, %cst_10 {dimension_numbers = #tpu.dot_dimension_numbers<[1], [0], [0], [1], [0, 0, 1, 1], [], []>} : vector<8x48xbf16>, vector<48x256xbf16>, vector<8x256xf32> -> vector<8x256xf32>
    %15 = arith.addf %10, %14 : vector<8x256xf32>
    %c0_11 = arith.constant 0 : index
    %c0_12 = arith.constant 0 : index
    %16 = vector.load %arg3[%c0_11, %c0_12] : memref<8x1xf32, #tpu.memory_space<vmem>>, vector<8x1xf32>
    %17 = vector.broadcast %16 : vector<8x1xf32> to vector<8x256xf32>
    %18 = arith.addf %15, %17 : vector<8x256xf32>
    %cst_13 = arith.constant dense<0.000000e+00> : vector<8xf32>
    %19 = vector.multi_reduction <add>, %18, %cst_13 [1] : vector<8x256xf32> to vector<8xf32>
    %20 = vector.shape_cast %19 : vector<8xf32> to vector<8x1xf32>
    %cst_14 = arith.constant 2.560000e+02 : f32
    %21 = vector.broadcast %cst_14 : f32 to vector<8x1xf32>
    %22 = arith.divf %20, %21 : vector<8x1xf32>
    %23 = vector.broadcast %22 : vector<8x1xf32> to vector<8x256xf32>
    %24 = arith.subf %18, %23 : vector<8x256xf32>
    %25 = arith.mulf %24, %24 : vector<8x256xf32>
    %cst_15 = arith.constant dense<0.000000e+00> : vector<8xf32>
    %26 = vector.multi_reduction <add>, %25, %cst_15 [1] : vector<8x256xf32> to vector<8xf32>
    %27 = vector.shape_cast %26 : vector<8xf32> to vector<8x1xf32>
    %cst_16 = arith.constant 2.560000e+02 : f32
    %28 = vector.broadcast %cst_16 : f32 to vector<8x1xf32>
    %29 = arith.divf %27, %28 : vector<8x1xf32>
    %30 = vector.broadcast %22 : vector<8x1xf32> to vector<8x256xf32>
    %31 = arith.subf %18, %30 : vector<8x256xf32>
    %cst_17 = arith.constant 9.99999974E-6 : f32
    %32 = vector.broadcast %cst_17 : f32 to vector<8x1xf32>
    %33 = arith.addf %29, %32 : vector<8x1xf32>
    %34 = math.rsqrt %33 : vector<8x1xf32>
    %35 = vector.broadcast %34 : vector<8x1xf32> to vector<8x256xf32>
    %36 = arith.mulf %31, %35 : vector<8x256xf32>
    %cst_18 = arith.constant 0.000000e+00 : f32
    %37 = vector.broadcast %cst_18 : f32 to vector<8x256xf32>
    %38 = arith.cmpf oge, %36, %37 : vector<8x256xf32>
    %cst_19 = arith.constant 0.00999999977 : f32
    %39 = vector.broadcast %cst_19 : f32 to vector<8x256xf32>
    %40 = arith.mulf %39, %36 : vector<8x256xf32>
    %41 = arith.select %38, %36, %40 : vector<8x256xi1>, vector<8x256xf32>
    %42 = arith.truncf %41 : vector<8x256xf32> to vector<8x256xbf16>
    %c0_20 = arith.constant 0 : index
    %c0_21 = arith.constant 0 : index
    %c0_22 = arith.constant 0 : index
    %43 = vector.load %arg4[%c0_20, %c0_21, %c0_22] : memref<1x8x256xbf16, #tpu.memory_space<vmem>>, vector<1x8x256xbf16>
    %44 = vector.shape_cast %43 : vector<1x8x256xbf16> to vector<8x256xbf16>
    %45 = vector.shape_cast %42 : vector<8x256xbf16> to vector<1x8x256xbf16>
    tpu.vector_store %arg4[%c0_20, %c0_21, %c0_22], %45 {strides = array<i32>} : memref<1x8x256xbf16, #tpu.memory_space<vmem>>, vector<1x8x256xbf16>,
    return
  }
  func.func @transform_0(%arg0: i32) -> (i32, i32, i32) {
    %c0_i32 = arith.constant 0 : i32
    %c0_i32_0 = arith.constant 0 : i32
    %c0_i32_1 = arith.constant 0 : i32
    return %arg0, %c0_i32, %c0_i32_0 : i32, i32, i32
  }
  func.func @transform_1(%arg0: i32) -> (i32, i32, i32) {
    %c0_i32 = arith.constant 0 : i32
    %c0_i32_0 = arith.constant 0 : i32
    %c0_i32_1 = arith.constant 0 : i32
    %c0_i32_2 = arith.constant 0 : i32
    return %c0_i32, %c0_i32_0, %c0_i32_1 : i32, i32, i32
  }
  func.func @transform_2(%arg0: i32) -> (i32, i32) {
    %c0_i32 = arith.constant 0 : i32
    %c0_i32_0 = arith.constant 0 : i32
    %c0_i32_1 = arith.constant 0 : i32
    return %c0_i32, %c0_i32_0 : i32, i32
  }
  func.func @transform_3(%arg0: i32) -> (i32, i32, i32) {
    %c0_i32 = arith.constant 0 : i32
    %c0_i32_0 = arith.constant 0 : i32
    %c0_i32_1 = arith.constant 0 : i32
    return %arg0, %c0_i32, %c0_i32_0 : i32, i32, i32
  }
}

module attributes {stable_mosaic.version = 11 : i64} {
  func.func @_conv3x3_in_lrelu_kernel(%arg0: i32, %arg1: memref<1x24x288xbf16, #tpu.memory_space<vmem>>, %arg2: memref<3x8x24xbf16, #tpu.memory_space<vmem>>, %arg3: memref<8x1xf32, #tpu.memory_space<vmem>>, %arg4: memref<1x8x256xf32, #tpu.memory_space<vmem>>) attributes {dimension_semantics = [#tpu.dimension_semantics<parallel>], iteration_bounds = array<i64: 2>, scalar_prefetch = 0 : i64, scratch_operands = 0 : i64, tpu.core_type = #tpu.core_type<tc>, window_params = [{transform_indices = @transform_0, window_bounds = array<i64: 1, 24, 288>}, {pipeline_mode = #tpu.pipeline_mode<synchronous>, transform_indices = @transform_1, window_bounds = array<i64: 3, 8, 24>}, {pipeline_mode = #tpu.pipeline_mode<synchronous>, transform_indices = @transform_2, window_bounds = array<i64: 8, 1>}, {transform_indices = @transform_3, window_bounds = array<i64: 1, 8, 256>}]} {
    %c0 = arith.constant 0 : index
    %c0_0 = arith.constant 0 : index
    %c0_1 = arith.constant 0 : index
    %0 = vector.load %arg1[%c0, %c0_0, %c0_1] : memref<1x24x288xbf16, #tpu.memory_space<vmem>>, vector<1x24x288xbf16>
    %1 = vector.shape_cast %0 : vector<1x24x288xbf16> to vector<24x288xbf16>
    %c0_2 = arith.constant 0 : index
    %c0_3 = arith.constant 0 : index
    %c0_4 = arith.constant 0 : index
    %2 = vector.load %arg2[%c0_2, %c0_3, %c0_4] : memref<3x8x24xbf16, #tpu.memory_space<vmem>>, vector<1x8x24xbf16>
    %3 = vector.shape_cast %2 : vector<1x8x24xbf16> to vector<8x24xbf16>
    %4 = vector.extract_strided_slice %1 {offsets = [0, 0], sizes = [24, 256], strides = [1, 1]} : vector<24x288xbf16> to vector<24x256xbf16>
    %cst = arith.constant dense<0.000000e+00> : vector<8x256xf32>
    %5 = tpu.matmul %3, %4, %cst {dimension_numbers = #tpu.dot_dimension_numbers<[1], [0], [0], [1], [0, 0, 1, 1], [], []>} : vector<8x24xbf16>, vector<24x256xbf16>, vector<8x256xf32> -> vector<8x256xf32>
    %c1 = arith.constant 1 : index
    %c0_5 = arith.constant 0 : index
    %c0_6 = arith.constant 0 : index
    %6 = vector.load %arg2[%c1, %c0_5, %c0_6] : memref<3x8x24xbf16, #tpu.memory_space<vmem>>, vector<1x8x24xbf16>
    %7 = vector.shape_cast %6 : vector<1x8x24xbf16> to vector<8x24xbf16>
    %8 = vector.extract_strided_slice %1 {offsets = [0, 16], sizes = [24, 256], strides = [1, 1]} : vector<24x288xbf16> to vector<24x256xbf16>
    %cst_7 = arith.constant dense<0.000000e+00> : vector<8x256xf32>
    %9 = tpu.matmul %7, %8, %cst_7 {dimension_numbers = #tpu.dot_dimension_numbers<[1], [0], [0], [1], [0, 0, 1, 1], [], []>} : vector<8x24xbf16>, vector<24x256xbf16>, vector<8x256xf32> -> vector<8x256xf32>
    %10 = arith.addf %5, %9 : vector<8x256xf32>
    %c2 = arith.constant 2 : index
    %c0_8 = arith.constant 0 : index
    %c0_9 = arith.constant 0 : index
    %11 = vector.load %arg2[%c2, %c0_8, %c0_9] : memref<3x8x24xbf16, #tpu.memory_space<vmem>>, vector<1x8x24xbf16>
    %12 = vector.shape_cast %11 : vector<1x8x24xbf16> to vector<8x24xbf16>
    %13 = vector.extract_strided_slice %1 {offsets = [0, 32], sizes = [24, 256], strides = [1, 1]} : vector<24x288xbf16> to vector<24x256xbf16>
    %cst_10 = arith.constant dense<0.000000e+00> : vector<8x256xf32>
    %14 = tpu.matmul %12, %13, %cst_10 {dimension_numbers = #tpu.dot_dimension_numbers<[1], [0], [0], [1], [0, 0, 1, 1], [], []>} : vector<8x24xbf16>, vector<24x256xbf16>, vector<8x256xf32> -> vector<8x256xf32>
    %15 = arith.addf %10, %14 : vector<8x256xf32>
    %c0_11 = arith.constant 0 : index
    %c0_12 = arith.constant 0 : index
    %16 = vector.load %arg3[%c0_11, %c0_12] : memref<8x1xf32, #tpu.memory_space<vmem>>, vector<8x1xf32>
    %17 = vector.broadcast %16 : vector<8x1xf32> to vector<8x256xf32>
    %18 = arith.addf %15, %17 : vector<8x256xf32>
    %cst_13 = arith.constant dense<0.000000e+00> : vector<8xf32>
    %19 = vector.multi_reduction <add>, %18, %cst_13 [1] : vector<8x256xf32> to vector<8xf32>
    %20 = vector.shape_cast %19 : vector<8xf32> to vector<8x1xf32>
    %cst_14 = arith.constant 2.560000e+02 : f32
    %21 = vector.broadcast %cst_14 : f32 to vector<8x1xf32>
    %22 = arith.divf %20, %21 : vector<8x1xf32>
    %23 = vector.broadcast %22 : vector<8x1xf32> to vector<8x256xf32>
    %24 = arith.subf %18, %23 : vector<8x256xf32>
    %25 = arith.mulf %24, %24 : vector<8x256xf32>
    %cst_15 = arith.constant dense<0.000000e+00> : vector<8xf32>
    %26 = vector.multi_reduction <add>, %25, %cst_15 [1] : vector<8x256xf32> to vector<8xf32>
    %27 = vector.shape_cast %26 : vector<8xf32> to vector<8x1xf32>
    %cst_16 = arith.constant 2.560000e+02 : f32
    %28 = vector.broadcast %cst_16 : f32 to vector<8x1xf32>
    %29 = arith.divf %27, %28 : vector<8x1xf32>
    %30 = vector.broadcast %22 : vector<8x1xf32> to vector<8x256xf32>
    %31 = arith.subf %18, %30 : vector<8x256xf32>
    %cst_17 = arith.constant 9.99999974E-6 : f32
    %32 = vector.broadcast %cst_17 : f32 to vector<8x1xf32>
    %33 = arith.addf %29, %32 : vector<8x1xf32>
    %34 = math.rsqrt %33 : vector<8x1xf32>
    %35 = vector.broadcast %34 : vector<8x1xf32> to vector<8x256xf32>
    %36 = arith.mulf %31, %35 : vector<8x256xf32>
    %cst_18 = arith.constant 0.000000e+00 : f32
    %37 = vector.broadcast %cst_18 : f32 to vector<8x256xf32>
    %38 = arith.cmpf oge, %36, %37 : vector<8x256xf32>
    %cst_19 = arith.constant 0.00999999977 : f32
    %39 = vector.broadcast %cst_19 : f32 to vector<8x256xf32>
    %40 = arith.mulf %39, %36 : vector<8x256xf32>
    %41 = arith.select %38, %36, %40 : vector<8x256xi1>, vector<8x256xf32>
    %c0_20 = arith.constant 0 : index
    %c0_21 = arith.constant 0 : index
    %c0_22 = arith.constant 0 : index
    %42 = vector.load %arg4[%c0_20, %c0_21, %c0_22] : memref<1x8x256xf32, #tpu.memory_space<vmem>>, vector<1x8x256xf32>
    %43 = vector.shape_cast %42 : vector<1x8x256xf32> to vector<8x256xf32>
    %44 = vector.shape_cast %41 : vector<8x256xf32> to vector<1x8x256xf32>
    tpu.vector_store %arg4[%c0_20, %c0_21, %c0_22], %44 {strides = array<i32>} : memref<1x8x256xf32, #tpu.memory_space<vmem>>, vector<1x8x256xf32>,
    return
  }
  func.func @transform_0(%arg0: i32) -> (i32, i32, i32) {
    %c0_i32 = arith.constant 0 : i32
    %c0_i32_0 = arith.constant 0 : i32
    %c0_i32_1 = arith.constant 0 : i32
    return %arg0, %c0_i32, %c0_i32_0 : i32, i32, i32
  }
  func.func @transform_1(%arg0: i32) -> (i32, i32, i32) {
    %c0_i32 = arith.constant 0 : i32
    %c0_i32_0 = arith.constant 0 : i32
    %c0_i32_1 = arith.constant 0 : i32
    %c0_i32_2 = arith.constant 0 : i32
    return %c0_i32, %c0_i32_0, %c0_i32_1 : i32, i32, i32
  }
  func.func @transform_2(%arg0: i32) -> (i32, i32) {
    %c0_i32 = arith.constant 0 : i32
    %c0_i32_0 = arith.constant 0 : i32
    %c0_i32_1 = arith.constant 0 : i32
    return %c0_i32, %c0_i32_0 : i32, i32
  }
  func.func @transform_3(%arg0: i32) -> (i32, i32, i32) {
    %c0_i32 = arith.constant 0 : i32
    %c0_i32_0 = arith.constant 0 : i32
    %c0_i32_1 = arith.constant 0 : i32
    return %arg0, %c0_i32, %c0_i32_0 : i32, i32, i32
  }
}

module attributes {stable_mosaic.version = 11 : i64} {
  func.func @_matmul_bias_kernel(%arg0: i32, %arg1: memref<1x8x256xbf16, #tpu.memory_space<vmem>>, %arg2: memref<3x8xbf16, #tpu.memory_space<vmem>>, %arg3: memref<3x1xf32, #tpu.memory_space<vmem>>, %arg4: memref<1x3x256xf32, #tpu.memory_space<vmem>>) attributes {dimension_semantics = [#tpu.dimension_semantics<parallel>], iteration_bounds = array<i64: 2>, scalar_prefetch = 0 : i64, scratch_operands = 0 : i64, tpu.core_type = #tpu.core_type<tc>, window_params = [{transform_indices = @transform_0, window_bounds = array<i64: 1, 8, 256>}, {pipeline_mode = #tpu.pipeline_mode<synchronous>, transform_indices = @transform_1, window_bounds = array<i64: 3, 8>}, {pipeline_mode = #tpu.pipeline_mode<synchronous>, transform_indices = @transform_2, window_bounds = array<i64: 3, 1>}, {transform_indices = @transform_3, window_bounds = array<i64: 1, 3, 256>}]} {
    %c0 = arith.constant 0 : index
    %c0_0 = arith.constant 0 : index
    %0 = vector.load %arg2[%c0, %c0_0] : memref<3x8xbf16, #tpu.memory_space<vmem>>, vector<3x8xbf16>
    %c0_1 = arith.constant 0 : index
    %c0_2 = arith.constant 0 : index
    %c0_3 = arith.constant 0 : index
    %1 = vector.load %arg1[%c0_1, %c0_2, %c0_3] : memref<1x8x256xbf16, #tpu.memory_space<vmem>>, vector<1x8x256xbf16>
    %2 = vector.shape_cast %1 : vector<1x8x256xbf16> to vector<8x256xbf16>
    %cst = arith.constant dense<0.000000e+00> : vector<3x256xf32>
    %3 = tpu.matmul %0, %2, %cst {dimension_numbers = #tpu.dot_dimension_numbers<[1], [0], [0], [1], [0, 0, 1, 1], [], []>} : vector<3x8xbf16>, vector<8x256xbf16>, vector<3x256xf32> -> vector<3x256xf32>
    %c0_4 = arith.constant 0 : index
    %c0_5 = arith.constant 0 : index
    %4 = vector.load %arg3[%c0_4, %c0_5] : memref<3x1xf32, #tpu.memory_space<vmem>>, vector<3x1xf32>
    %5 = vector.broadcast %4 : vector<3x1xf32> to vector<3x256xf32>
    %6 = arith.addf %3, %5 : vector<3x256xf32>
    %c0_6 = arith.constant 0 : index
    %c0_7 = arith.constant 0 : index
    %c0_8 = arith.constant 0 : index
    %7 = vector.load %arg4[%c0_6, %c0_7, %c0_8] : memref<1x3x256xf32, #tpu.memory_space<vmem>>, vector<1x3x256xf32>
    %8 = vector.shape_cast %7 : vector<1x3x256xf32> to vector<3x256xf32>
    %9 = vector.shape_cast %6 : vector<3x256xf32> to vector<1x3x256xf32>
    tpu.vector_store %arg4[%c0_6, %c0_7, %c0_8], %9 {strides = array<i32>} : memref<1x3x256xf32, #tpu.memory_space<vmem>>, vector<1x3x256xf32>,
    return
  }
  func.func @transform_0(%arg0: i32) -> (i32, i32, i32) {
    %c0_i32 = arith.constant 0 : i32
    %c0_i32_0 = arith.constant 0 : i32
    %c0_i32_1 = arith.constant 0 : i32
    return %arg0, %c0_i32, %c0_i32_0 : i32, i32, i32
  }
  func.func @transform_1(%arg0: i32) -> (i32, i32) {
    %c0_i32 = arith.constant 0 : i32
    %c0_i32_0 = arith.constant 0 : i32
    %c0_i32_1 = arith.constant 0 : i32
    return %c0_i32, %c0_i32_0 : i32, i32
  }
  func.func @transform_2(%arg0: i32) -> (i32, i32) {
    %c0_i32 = arith.constant 0 : i32
    %c0_i32_0 = arith.constant 0 : i32
    %c0_i32_1 = arith.constant 0 : i32
    return %c0_i32, %c0_i32_0 : i32, i32
  }
  func.func @transform_3(%arg0: i32) -> (i32, i32, i32) {
    %c0_i32 = arith.constant 0 : i32
    %c0_i32_0 = arith.constant 0 : i32
    %c0_i32_1 = arith.constant 0 : i32
    return %arg0, %c0_i32, %c0_i32_0 : i32, i32, i32
  }
}

</mosaic_0001>

<bundles_post_ra>
// kernel: tile.13
= control target key start
LH: loop header
LB: loop body
LE: loop exit
PB: predicated region body
PF: predicated region fallthrough
CT: control target
= control target key end

     0   :  { %s22_s0 = inlined_call_operand.vmem [shape: f32[16], index: 0, kind: input, shape index: {}]   ;;  %s23_s1 = inlined_call_operand.vmem [shape: f32[4,16], index: 1, kind: output, shape index: {}]  }
   0x1   :  { %v4_v0 = vld [vmem:[%s22_s0] ss:$0 sm:$0xff] }
   0x2   :  { %5 = vst [vmem:[%s23_s1] sm:$0xf] %v4_v0 }

// kernel: tile.0
= control target key start
LH: loop header
LB: loop body
LE: loop exit
PB: predicated region body
PF: predicated region fallthrough
CT: control target
= control target key end

     0   :  { %s177_s8 = smov 125   ;;  %s178_s9 = smov 126   ;;  %vm8_vm0 = vcmask 7168   ;;  %s332_s0 = inlined_call_operand.vmem [shape: f32[4,16], index: 0, kind: input, shape index: {}]   ;;  %s333_s1 = inlined_call_operand.vmem [shape: f32[64,1], index: 1, kind: output, shape index: {}]  }
   0x1   :  { %v5_v0 = vld [vmem:[%s332_s0] sm:$0xf]  ;;  %s176_s0 = smov 127   ;;  %s179_s10 = smov 124  }
   0x2   :  { %6 = vst [vmem:[#allocation0] sm:$0xf] %v5_v0  ;;  %s180_s11 = smov 123   ;;  %s181_s12 = smov 122  }
   0x3   :  { %s182_s13 = smov 121   ;;  %s183_s14 = smov 120  }
   0x4   :  { %s184_s19 = smov 119   ;;  %s185_s20 = smov 118  }
   0x5   :  { %s186_s21 = smov 117   ;;  %s187_s22 = smov 116  }
   0x6   :  { %s188_s23 = smov 115   ;;  %s189_s24 = smov 114  }
   0x7   :  { %s190_s25 = smov 113  }
   0x9   :  { %v11_v1 = vld [vmem:[#allocation0] sm:$0xf]  }
   0xa   :  { %v27_v2 = vld [vmem:[#allocation0] sm:$0xf]   ;;  %12 = vrot.lane.b32.xlu0 %v11_v1, %s176_s0 }
   0xb   :  { %28 = vrot.lane.b32.xlu1 %v27_v2, %s177_s8  ;;  %v19_v3 = vld [vmem:[#allocation0] sm:$0xf]  }
   0xc   :  { %v35_v4 = vld [vmem:[#allocation0] sm:$0xf]  }
   0xd   :  { %v43_v5 = vld [vmem:[#allocation0] sm:$0xf]  }
   0xe   :  { %20 = vrot.lane.b32.xlu0 %v19_v3, %s178_s9  ;;  %v51_v6 = vld [vmem:[#allocation0] sm:$0xf]  }
   0xf   :  { %36 = vrot.lane.b32.xlu1 %v35_v4, %s179_s10  ;;  %v59_v7 = vld [vmem:[#allocation0] sm:$0xf]  }
  0x10   :  { %v67_v8 = vld [vmem:[#allocation0] sm:$0xf]  }
  0x11   :  { %v75_v9 = vld [vmem:[#allocation0] sm:$0xf]  }
  0x12   :  { %44 = vrot.lane.b32.xlu0 %v43_v5, %s180_s11  ;;  %v83_v10 = vld [vmem:[#allocation0] sm:$0xf]  }
  0x13   :  { %52 = vrot.lane.b32.xlu1 %v51_v6, %s181_s12  ;;  %v7_v11 = vld [vmem:[#allocation0] sm:$0xf]  }
  0x14   :  { %9 = vst.msk [vmem:[%s333_s1] ss:$16 sm:$0x3] %vm8_vm0, %v7_v11   ;;  %10 = vst.msk [vmem:[%s333_s1] ss:$16 sm:$0xc] %vm8_vm0, %v7_v11  }
  0x15   :  { %v91_v12 = vld [vmem:[#allocation0] sm:$0xf]  }
  0x16   :  { %60 = vrot.lane.b32.xlu0 %v59_v7, %s182_s13  ;;  %v99_v13 = vld [vmem:[#allocation0] sm:$0xf]  }
  0x17   :  { %68 = vrot.lane.b32.xlu1 %v67_v8, %s183_s14  ;;  %v107_v14 = vld [vmem:[#allocation0] sm:$0xf]  }
  0x18   :  { %v115_v15 = vld [vmem:[#allocation0] sm:$0xf]  }
  0x19   :  { %v123_v16 = vld [vmem:[#allocation0] sm:$0xf]  }
  0x1a   :  { %76 = vrot.lane.b32.xlu0 %v75_v9, %s184_s19 }
  0x1b   :  { %84 = vrot.lane.b32.xlu1 %v83_v10, %s185_s20 }
  0x1e   :  { %92 = vrot.lane.b32.xlu0 %v91_v12, %s186_s21 }
  0x1f   :  { %100 = vrot.lane.b32.xlu1 %v99_v13, %s187_s22 }
  0x22   :  { %108 = vrot.lane.b32.xlu0 %v107_v14, %s188_s23 }
  0x23   :  { %116 = vrot.lane.b32.xlu1 %v115_v15, %s189_s24 }
  0x26   :  { %124 = vrot.lane.b32.xlu0 %v123_v16, %s190_s25 }
  0x7c   :  { %v13_v17 = vpop.permute.xlu0 %12  }
  0x7d   :  { %v29_v18 = vpop.permute.xlu1 %28   ;;  %131 = vst.msk [vmem:[%s333_s1 + $0x1] ss:$16 sm:$0x3] %vm8_vm0, %v13_v17   ;;  %132 = vst.msk [vmem:[%s333_s1 + $0x1] ss:$16 sm:$0xc] %vm8_vm0, %v13_v17  }
  0x7e   :  { %135 = vst.msk [vmem:[%s333_s1 + $0x3] ss:$16 sm:$0x3] %vm8_vm0, %v29_v18   ;;  %136 = vst.msk [vmem:[%s333_s1 + $0x3] ss:$16 sm:$0xc] %vm8_vm0, %v29_v18  }
  0x80   :  { %v21_v19 = vpop.permute.xlu0 %20  }
  0x81   :  { %v37_v20 = vpop.permute.xlu1 %36   ;;  %133 = vst.msk [vmem:[%s333_s1 + $0x2] ss:$16 sm:$0x3] %vm8_vm0, %v21_v19   ;;  %134 = vst.msk [vmem:[%s333_s1 + $0x2] ss:$16 sm:$0xc] %vm8_vm0, %v21_v19  }
  0x82   :  { %137 = vst.msk [vmem:[%s333_s1 + $0x4] ss:$16 sm:$0x3] %vm8_vm0, %v37_v20   ;;  %138 = vst.msk [vmem:[%s333_s1 + $0x4] ss:$16 sm:$0xc] %vm8_vm0, %v37_v20  }
  0x84   :  { %v45_v21 = vpop.permute.xlu0 %44  }
  0x85   :  { %v53_v22 = vpop.permute.xlu1 %52   ;;  %139 = vst.msk [vmem:[%s333_s1 + $0x5] ss:$16 sm:$0x3] %vm8_vm0, %v45_v21   ;;  %140 = vst.msk [vmem:[%s333_s1 + $0x5] ss:$16 sm:$0xc] %vm8_vm0, %v45_v21  }
  0x86   :  { %141 = vst.msk [vmem:[%s333_s1 + $0x6] ss:$16 sm:$0x3] %vm8_vm0, %v53_v22   ;;  %142 = vst.msk [vmem:[%s333_s1 + $0x6] ss:$16 sm:$0xc] %vm8_vm0, %v53_v22  }
  0x88   :  { %v61_v23 = vpop.permute.xlu0 %60  }
  0x89   :  { %v69_v24 = vpop.permute.xlu1 %68   ;;  %143 = vst.msk [vmem:[%s333_s1 + $0x7] ss:$16 sm:$0x3] %vm8_vm0, %v61_v23   ;;  %144 = vst.msk [vmem:[%s333_s1 + $0x7] ss:$16 sm:$0xc] %vm8_vm0, %v61_v23  }
  0x8a   :  { %145 = vst.msk [vmem:[%s333_s1 + $0x8] ss:$16 sm:$0x3] %vm8_vm0, %v69_v24   ;;  %146 = vst.msk [vmem:[%s333_s1 + $0x8] ss:$16 sm:$0xc] %vm8_vm0, %v69_v24  }
  0x8c   :  { %v77_v25 = vpop.permute.xlu0 %76  }
  0x8d   :  { %v85_v26 = vpop.permute.xlu1 %84   ;;  %147 = vst.msk [vmem:[%s333_s1 + $0x9] ss:$16 sm:$0x3] %vm8_vm0, %v77_v25   ;;  %148 = vst.msk [vmem:[%s333_s1 + $0x9] ss:$16 sm:$0xc] %vm8_vm0, %v77_v25  }
  0x8e   :  { %149 = vst.msk [vmem:[%s333_s1 + $0xa] ss:$16 sm:$0x3] %vm8_vm0, %v85_v26   ;;  %150 = vst.msk [vmem:[%s333_s1 + $0xa] ss:$16 sm:$0xc] %vm8_vm0, %v85_v26  }
  0x90   :  { %v93_v27 = vpop.permute.xlu0 %92  }
  0x91   :  { %v101_v28 = vpop.permute.xlu1 %100   ;;  %151 = vst.msk [vmem:[%s333_s1 + $0xb] ss:$16 sm:$0x3] %vm8_vm0, %v93_v27   ;;  %152 = vst.msk [vmem:[%s333_s1 + $0xb] ss:$16 sm:$0xc] %vm8_vm0, %v93_v27  }
  0x92   :  { %153 = vst.msk [vmem:[%s333_s1 + $0xc] ss:$16 sm:$0x3] %vm8_vm0, %v101_v28   ;;  %154 = vst.msk [vmem:[%s333_s1 + $0xc] ss:$16 sm:$0xc] %vm8_vm0, %v101_v28  }
  0x94   :  { %v109_v29 = vpop.permute.xlu0 %108  }
  0x95   :  { %v117_v30 = vpop.permute.xlu1 %116   ;;  %155 = vst.msk [vmem:[%s333_s1 + $0xd] ss:$16 sm:$0x3] %vm8_vm0, %v109_v29   ;;  %156 = vst.msk [vmem:[%s333_s1 + $0xd] ss:$16 sm:$0xc] %vm8_vm0, %v109_v29  }
  0x96   :  { %157 = vst.msk [vmem:[%s333_s1 + $0xe] ss:$16 sm:$0x3] %vm8_vm0, %v117_v30   ;;  %158 = vst.msk [vmem:[%s333_s1 + $0xe] ss:$16 sm:$0xc] %vm8_vm0, %v117_v30  }
  0x98   :  { %v125_v31 = vpop.permute.xlu0 %124  }
  0x99   :  { %159 = vst.msk [vmem:[%s333_s1 + $0xf] ss:$16 sm:$0x3] %vm8_vm0, %v125_v31   ;;  %160 = vst.msk [vmem:[%s333_s1 + $0xf] ss:$16 sm:$0xc] %vm8_vm0, %v125_v31  }

// kernel: st_d_forward.7
= control target key start
LH: loop header
LB: loop body
LE: loop exit
PB: predicated region body
PF: predicated region fallthrough
CT: control target
= control target key end

     0   :  { %s545_s12 = smov 0   ;;  %s614_s0 = inlined_call_operand.vmem [shape: bf16[2,32,16], index: 0, kind: input, shape index: {}]   ;;  %s615_s1 = inlined_call_operand.vmem [shape: bf16[64,32], index: 1, kind: input, shape index: {}]   ;;  %s616_s2 = inlined_call_operand.vmem [shape: f32[64,1], index: 2, kind: input, shape index: {}]   ;;  %s617_s3 = inlined_call_operand.vmem [shape: bf16[2,64,16], index: 3, kind: output, shape index: {}]  }
   0x1 LB: > { %s438_s13 = sadd.s32 4294967295, %s522_s12   ;;  %p442_p0 = scmp.ge.s32.totalorder %s522_s12, 1  ;;  %s522_s12 = sphi %s545_s12, %s13_s12  }
   0x2   : > { %p137_p1 = scmp.lt.s32.totalorder %s522_s12, 3 }
   0x4   : > { %p138_p2 = pnand %p442_p0, %p137_p1 }
   0x5   : > { %p161_p3 = scmp.lt.s32.totalorder (!%p138_p2), %s438_s13, 1 }
   0x6   : > { %141 = sbr.rel (%p138_p2) target bundleno = 227 (0xe3), region = 32 }
   0xb   : > { %v512_v0 = vld [vmem:[%s615_s1] sm:$0xff]   ;;  %vm264_vm0 = vcmask 261120   ;;  %v513_v1 = vld [vmem:[%s615_s1 + $0x10] sm:$0xff]   ;;  %s619_s13 = smov (!%p161_p3, %s438_s13), 1  ;;  %v524_v2 = vmov 0   ;;  %v187_v7 = vld [vmem:[%s616_s2 + $0x18] sm:$0xff] }
   0xc   : > { %487 = vmatprep.mubr.msk.bf16.mxu0 %vm264_vm0, %v512_v0  ;;  %491 = vmatprep.mubr.msk.bf16.mxu1 %vm264_vm0, %v513_v1  ;;  %s467_s18 = sshll.u32 %s619_s13, 4  ;;  %v186_v3 = vld [vmem:[%s616_s2 + $0x10] sm:$0xff]  ;;  %v184_v4 = vld [vmem:[%s616_s2] sm:$0xff]  ;;  %v185_v8 = vld [vmem:[%s616_s2 + $0x8] sm:$0xff]  ;;  %s468_s17 = sshll.u32 %s619_s13, 5  ;;  %vm374_vm1 = vcmask 125952  }
   0xd   : > { %509 = vset.pattern.permute.xlu1 %v524_v2  ;;  %508 = vset.pattern.permute.xlu0 %v524_v2  ;;  %s165_s25 = scalar_lea.vmem %s614_s0, %s467_s18  ;;  %v514_v9 = vld [vmem:[%s615_s1 + $0x8] sm:$0xff]   ;;  %v515_v10 = vld [vmem:[%s615_s1 + $0x18] sm:$0xff]   ;;  %v188_v12 = vld [vmem:[%s616_s2 + $0x20] sm:$0xff]  ;;  %s170_s20 = scalar_lea.vmem %s617_s3, %s468_s17 }
   0xe   : > { %204 = vperm.xlu1 %509, %v186_v3   ;;  %194 = vperm.xlu0 %508, %v184_v4   ;;  %v510_v5 = vld [vmem:[%s165_s25 + $0x8] sm:$0xff]   ;;  %v511_v6 = vld [vmem:[%s165_s25] sm:$0xff]   ;;  %v191_v13 = vld [vmem:[%s616_s2 + $0x38] sm:$0xff] }
   0xf   : > { %483 = vmatprep.subr.bf16.mxu0 %v510_v5  ;;  %495 = vmatprep.subr.bf16.mxu1 %v510_v5  ;;  %v189_v11 = vld [vmem:[%s616_s2 + $0x28] sm:$0xff]  ;;  %v190_v14 = vld [vmem:[%s616_s2 + $0x30] sm:$0xff] }
  0x10   : > { %484 = vmatpush3.bf16.msra.mxu0 %v510_v5  ;;  %497 = vmatpush3.bf16.msra.mxu1 %v510_v5 }
  0x11   : > { %485 = vmatprep.subr.bf16.mxu0 %v511_v6  ;;  %496 = vmatprep.subr.bf16.mxu1 %v511_v6 }
  0x12   : > { %209 = vperm.xlu1 %509, %v187_v7   ;;  %199 = vperm.xlu0 %508, %v185_v8  }
  0x14   : > { %486 = vmatpush3.bf16.msra.mxu0 %v511_v6  ;;  %498 = vmatpush3.bf16.msra.mxu1 %v511_v6 }
  0x16   : > { %219 = vperm.xlu1 %509, %v189_v11   ;;  %214 = vperm.xlu0 %508, %v188_v12  }
  0x17   : > { %488 = vmatmul.mubr.msk.bf16.vlgmr.msra.gmra.mxu0 %vm264_vm0, %v514_v9  ;;  %492 = vmatmul.mubr.msk.bf16.vlgmr.msra.gmra.mxu1 %vm264_vm0, %v515_v10 }
  0x1a   : > { %229 = vperm.xlu1 %509, %v191_v13   ;;  %224 = vperm.xlu0 %508, %v190_v14  }
  0x89   : > { %v195_v15 = vpop.permute.xlu0 %194  ;;  %v205_v16 = vpop.permute.xlu1 %204 }
  0x8d   : > { %v200_v17 = vpop.permute.xlu0 %199  ;;  %v210_v18 = vpop.permute.xlu1 %209 }
  0x91   : > { %v215_v19 = vpop.permute.xlu0 %214  ;;  %v220_v20 = vpop.permute.xlu1 %219 }
  0x95   : > { %v225_v21 = vpop.permute.xlu0 %224  ;;  %v230_v28 = vpop.permute.xlu1 %229 }
  0xd7   : > { %v489_v22 = vpop.f32.mrf.mxu0  ;;  %v493_v23 = vpop.f32.mrf.mxu1 }
  0xd8   : > { %v320_v24 = vadd.f32 %v489_v22, %v205_v16  ;;  %v336_v25 = vadd.f32 %v493_v23, %v225_v21 }
  0xd9   : > { %v311_v26 = vpop.f32.mrf.mxu0  ;;  %v327_v27 = vpop.f32.mrf.mxu1 }
  0xda   : > { %v471_v29 = vpack.c.bf16 %v320_v24, %v320_v24  ;;  %v475_v30 = vpack.c.bf16 %v336_v25, %v336_v25  ;;  %v312_v31 = vadd.f32 %v311_v26, %v195_v15  ;;  %v328_v32 = vadd.f32 %v327_v27, %v215_v19 }
  0xdb   : > { %v490_v33 = vpop.f32.mrf.mxu0  ;;  %v494_v34 = vpop.f32.mrf.mxu1 }
  0xdc   : > { %377 = vst.msk [vmem:[%s170_s20 + $0x8] sm:$0xf] %vm374_vm1, %v471_v29  ;;  %381 = vst.msk [vmem:[%s170_s20 + $0x18] sm:$0xf] %vm374_vm1, %v475_v30  ;;  %v469_v35 = vpack.c.bf16 %v312_v31, %v312_v31  ;;  %v473_v36 = vpack.c.bf16 %v328_v32, %v328_v32  ;;  %v323_v37 = vadd.f32 %v490_v33, %v210_v18 }
  0xdd   : > { %v339_v38 = vadd.f32 %v494_v34, %v230_v28  ;;  %v314_v39 = vpop.f32.mrf.mxu0  ;;  %v330_v40 = vpop.f32.mrf.mxu1 }
  0xde   : > { %375 = vst.msk [vmem:[%s170_s20] sm:$0xf] %vm374_vm1, %v469_v35  ;;  %379 = vst.msk [vmem:[%s170_s20 + $0x10] sm:$0xf] %vm374_vm1, %v473_v36  ;;  %v472_v41 = vpack.c.bf16 %v323_v37, %v323_v37  ;;  %v315_v43 = vadd.f32 %v314_v39, %v200_v17  ;;  %v331_v44 = vadd.f32 %v330_v40, %v220_v20 }
  0xdf   : > { %v476_v42 = vpack.c.bf16 %v339_v38, %v339_v38 }
  0xe0   : > { %378 = vst.msk [vmem:[%s170_s20 + $0xc] sm:$0xf] %vm374_vm1, %v472_v41  ;;  %v470_v45 = vpack.c.bf16 %v315_v43, %v315_v43  ;;  %v474_v46 = vpack.c.bf16 %v331_v44, %v331_v44 }
  0xe1   : > { %382 = vst.msk [vmem:[%s170_s20 + $0x1c] sm:$0xf] %vm374_vm1, %v476_v42 }
  0xe2   : > { %376 = vst.msk [vmem:[%s170_s20 + $0x4] sm:$0xf] %vm374_vm1, %v470_v45  ;;  %380 = vst.msk [vmem:[%s170_s20 + $0x14] sm:$0xf] %vm374_vm1, %v474_v46 }
  0xe3 PF: > { %s13_s12 = sadd.s32 1, %s522_s12  }
  0xe4   : > { %p10_p4 = scmp.ge.s32.totalorder %s13_s12, 4  }
  0xe6   :  { %12 = sbr.rel (!%p10_p4) target bundleno = 1 (0x1), region = 62 }

// kernel: tile.18
= control target key start
LH: loop header
LB: loop body
LE: loop exit
PB: predicated region body
PF: predicated region fallthrough
CT: control target
= control target key end

     0   :  { %s22_s0 = inlined_call_operand.vmem [shape: f32[8], index: 0, kind: input, shape index: {}]   ;;  %s23_s1 = inlined_call_operand.vmem [shape: f32[4,8], index: 1, kind: output, shape index: {}]  }
   0x1   :  { %v4_v0 = vld [vmem:[%s22_s0] ss:$0 sm:$0xff] }
   0x2   :  { %5 = vst [vmem:[%s23_s1] sm:$0xf] %v4_v0 }

// kernel: tile.1
= control target key start
LH: loop header
LB: loop body
LE: loop exit
PB: predicated region body
PF: predicated region fallthrough
CT: control target
= control target key end

     0   :  { %s67_s8 = smov 125   ;;  %vm8_vm0 = vcmask 7168   ;;  %s68_s11 = smov 126   ;;  %s118_s0 = inlined_call_operand.vmem [shape: f32[4,8], index: 0, kind: input, shape index: {}]   ;;  %s119_s1 = inlined_call_operand.vmem [shape: f32[32,1], index: 1, kind: output, shape index: {}]  }
   0x1   :  { %v5_v0 = vld [vmem:[%s118_s0] sm:$0xf]  ;;  %s66_s0 = smov 127   ;;  %s69_s12 = smov 124  }
   0x2   :  { %6 = vst [vmem:[#allocation0] sm:$0xf] %v5_v0  ;;  %s70_s13 = smov 123   ;;  %s71_s14 = smov 122  }
   0x3   :  { %s72_s15 = smov 121  }
   0x9   :  { %v10_v1 = vld [vmem:[#allocation0] sm:$0xf]  }
   0xa   :  { %v22_v2 = vld [vmem:[#allocation0] sm:$0xf]   ;;  %11 = vrot.lane.b32.xlu0 %v10_v1, %s66_s0 }
   0xb   :  { %23 = vrot.lane.b32.xlu1 %v22_v2, %s67_s8  ;;  %v16_v3 = vld [vmem:[#allocation0] sm:$0xf]  }
   0xc   :  { %v28_v4 = vld [vmem:[#allocation0] sm:$0xf]  }
   0xd   :  { %v7_v5 = vld [vmem:[#allocation0] sm:$0xf]  }
   0xe   :  { %9 = vst.msk [vmem:[%s119_s1] ss:$8 sm:$0xf] %vm8_vm0, %v7_v5   ;;  %17 = vrot.lane.b32.xlu0 %v16_v3, %s68_s11  ;;  %v34_v6 = vld [vmem:[#allocation0] sm:$0xf]  }
   0xf   :  { %29 = vrot.lane.b32.xlu1 %v28_v4, %s69_s12  ;;  %v40_v7 = vld [vmem:[#allocation0] sm:$0xf]  }
  0x10   :  { %v46_v8 = vld [vmem:[#allocation0] sm:$0xf]  }
  0x12   :  { %35 = vrot.lane.b32.xlu0 %v34_v6, %s70_s13 }
  0x13   :  { %41 = vrot.lane.b32.xlu1 %v40_v7, %s71_s14 }
  0x16   :  { %47 = vrot.lane.b32.xlu0 %v46_v8, %s72_s15 }
  0x7c   :  { %v12_v9 = vpop.permute.xlu0 %11  }
  0x7d   :  { %v24_v10 = vpop.permute.xlu1 %23   ;;  %52 = vst.msk [vmem:[%s119_s1 + $0x1] ss:$8 sm:$0xf] %vm8_vm0, %v12_v9  }
  0x7e   :  { %54 = vst.msk [vmem:[%s119_s1 + $0x3] ss:$8 sm:$0xf] %vm8_vm0, %v24_v10  }
  0x80   :  { %v18_v11 = vpop.permute.xlu0 %17  }
  0x81   :  { %v30_v12 = vpop.permute.xlu1 %29   ;;  %53 = vst.msk [vmem:[%s119_s1 + $0x2] ss:$8 sm:$0xf] %vm8_vm0, %v18_v11  }
  0x82   :  { %55 = vst.msk [vmem:[%s119_s1 + $0x4] ss:$8 sm:$0xf] %vm8_vm0, %v30_v12  }
  0x84   :  { %v36_v13 = vpop.permute.xlu0 %35  }
  0x85   :  { %v42_v14 = vpop.permute.xlu1 %41   ;;  %56 = vst.msk [vmem:[%s119_s1 + $0x5] ss:$8 sm:$0xf] %vm8_vm0, %v36_v13  }
  0x86   :  { %57 = vst.msk [vmem:[%s119_s1 + $0x6] ss:$8 sm:$0xf] %vm8_vm0, %v42_v14  }
  0x88   :  { %v48_v15 = vpop.permute.xlu0 %47  }
  0x89   :  { %58 = vst.msk [vmem:[%s119_s1 + $0x7] ss:$8 sm:$0xf] %vm8_vm0, %v48_v15  }

// kernel: st_d_forward.8
= control target key start
LH: loop header
LB: loop body
LE: loop exit
PB: predicated region body
PF: predicated region fallthrough
CT: control target
= control target key end

     0   :  { %s690_s12 = smov 0   ;;  %s757_s0 = inlined_call_operand.vmem [shape: bf16[2,96,80], index: 0, kind: input, shape index: {}]   ;;  %s758_s1 = inlined_call_operand.vmem [shape: bf16[3,16,96], index: 1, kind: input, shape index: {}]   ;;  %s759_s2 = inlined_call_operand.vmem [shape: f32[16,1], index: 2, kind: input, shape index: {}]   ;;  %s760_s3 = inlined_call_operand.vmem [shape: bf16[2,16,64], index: 3, kind: output, shape index: {}]  }
   0x1 LB: > { %s528_s13 = sadd.s32 4294967295, %s663_s12   ;;  %p532_p0 = scmp.ge.s32.totalorder %s663_s12, 1  ;;  %s663_s12 = sphi %s690_s12, %s13_s12  }
   0x2   : > { %p137_p1 = scmp.lt.s32.totalorder %s663_s12, 3 }
   0x4   : > { %p138_p2 = pnand %p532_p0, %p137_p1 }
   0x5   : > { %p161_p3 = scmp.lt.s32.totalorder (!%p138_p2), %s528_s13, 1  ;;  %s666_s18 = smov (!%p138_p2), 120  }
   0x6   : > { %141 = sbr.rel (%p138_p2) target bundleno = 689 (0x2b1), region = 32  ;;  %s668_s19 = smov (!%p138_p2), 112  }
   0xb   : > { %v665_v0 = vmov 0.0   ;;  %s762_s13 = smov (!%p161_p3, %s528_s13), 1  ;;  %vm667_vm0 = vmmov 0   ;;  %v651_v7 = vld [vmem:[%s758_s1] sm:$0xff]   ;;  %vm242_vm1 = vcmask 785408   ;;  %v415_v9 = vld [vmem:[%s759_s2 + $0x8] sm:$0xff] }
   0xc   : > { %580 = vmatprep.subr.bf16.mxu0 %v665_v0  ;;  %596 = vmatprep.subr.bf16.mxu1 %v665_v0  ;;  %s628_s14 = smul.u32 48, %s762_s13  ;;  %v414_v8 = vld [vmem:[%s759_s2] sm:$0xff]  ;;  %v669_v10 = vmov 0   ;;  %v650_v17 = vld [vmem:[%s758_s1 + $0x8] sm:$0xff]   ;;  %v652_v24 = vld [vmem:[%s758_s1 + $0x10] sm:$0xff]   ;;  %vm428_vm2 = vcmask 523264  }
   0xd   : > { %592 = vmatprep.mubr.msk.bf16.mxu0 %vm667_vm0, %v665_v0  ;;  %608 = vmatprep.mubr.msk.bf16.mxu1 %vm667_vm0, %v665_v0  ;;  %s556_s30 = sshll.u32 %s762_s13, 3  ;;  %vm470_vm4 = vcmask 519168  }
   0xe   : > { %s165_s17 = scalar_lea.vmem %s757_s0, %s628_s14  ;;  %642 = vset.pattern.permute.xlu0 %v669_v10  ;;  %643 = vset.pattern.permute.xlu1 %v669_v10  ;;  %s170_s6 = scalar_lea.vmem %s760_s3, %s556_s30 }
   0xf   : > { %v644_v1 = vld [vmem:[%s165_s17 + $0x28] sm:$0xff]   ;;  %v645_v2 = vld [vmem:[%s165_s17 + $0x20] sm:$0xff]   ;;  %v646_v3 = vld [vmem:[%s165_s17 + $0x18] sm:$0xff]  }
  0x10   : > { %234 = vrot.lane.b32.xlu0 %v644_v1, %s666_s18  ;;  %597 = vmatpush3.bf16.msra.mxu1 %v644_v1  ;;  %v647_v4 = vld [vmem:[%s165_s17 + $0x10] sm:$0xff]   ;;  %v648_v5 = vld [vmem:[%s165_s17 + $0x8] sm:$0xff]   ;;  %v649_v6 = vld [vmem:[%s165_s17] sm:$0xff]  }
  0x11   : > { %598 = vmatprep.subr.bf16.mxu1 %v665_v0  ;;  %230 = vrot.lane.b32.xlu1 %v646_v3, %s666_s18 }
  0x14   : > { %232 = vrot.lane.b32.xlu0 %v645_v2, %s666_s18  ;;  %599 = vmatpush3.bf16.msra.mxu1 %v645_v2 }
  0x15   : > { %600 = vmatprep.subr.bf16.mxu1 %v665_v0  ;;  %228 = vrot.lane.b32.xlu1 %v647_v4, %s666_s18 }
  0x18   : > { %226 = vrot.lane.b32.xlu0 %v648_v5, %s666_s18  ;;  %601 = vmatpush3.bf16.msra.mxu1 %v646_v3 }
  0x19   : > { %602 = vmatprep.subr.bf16.mxu1 %v665_v0  ;;  %224 = vrot.lane.b32.xlu1 %v649_v6, %s666_s18 }
  0x1c   : > { %360 = vrot.lane.b32.xlu0 %v644_v1, %s668_s19  ;;  %603 = vmatpush3.bf16.msra.mxu1 %v647_v4 }
  0x1d   : > { %604 = vmatprep.subr.bf16.mxu1 %v665_v0  ;;  %358 = vrot.lane.b32.xlu1 %v645_v2, %s668_s19 }
  0x20   : > { %356 = vrot.lane.b32.xlu0 %v646_v3, %s668_s19  ;;  %605 = vmatpush3.bf16.msra.mxu1 %v648_v5 }
  0x21   : > { %606 = vmatprep.subr.bf16.mxu1 %v665_v0  ;;  %354 = vrot.lane.b32.xlu1 %v647_v4, %s668_s19 }
  0x24   : > { %352 = vrot.lane.b32.xlu0 %v648_v5, %s668_s19  ;;  %607 = vmatpush3.bf16.msra.mxu1 %v649_v6 }
  0x25   : > { %350 = vrot.lane.b32.xlu1 %v649_v6, %s668_s19 }
  0x27   : > { %609 = vmatmul.mubr.msk.bf16.vlgmr.msra.gmra.mxu1 %vm242_vm1, %v651_v7 }
  0x28   : > { %418 = vperm.xlu0 %642, %v414_v8  }
  0x29   : > { %423 = vperm.xlu1 %643, %v415_v9  }
  0x82   : > { %v235_v11 = vpop.permute.xlu0 %234 }
  0x83   : > { %581 = vmatpush3.bf16.msra.mxu0 %v235_v11  ;;  %v231_v13 = vpop.permute.xlu1 %230 }
  0x84   : > { %582 = vmatprep.subr.bf16.mxu0 %v665_v0 }
  0x86   : > { %v233_v12 = vpop.permute.xlu0 %232 }
  0x87   : > { %583 = vmatpush3.bf16.msra.mxu0 %v233_v12  ;;  %v229_v14 = vpop.permute.xlu1 %228 }
  0x88   : > { %584 = vmatprep.subr.bf16.mxu0 %v665_v0 }
  0x8a   : > { %v227_v15 = vpop.permute.xlu0 %226 }
  0x8b   : > { %585 = vmatpush3.bf16.msra.mxu0 %v231_v13  ;;  %v225_v16 = vpop.permute.xlu1 %224 }
  0x8c   : > { %586 = vmatprep.subr.bf16.mxu0 %v665_v0 }
  0x8e   : > { %v361_v18 = vpop.permute.xlu0 %360 }
  0x8f   : > { %587 = vmatpush3.bf16.msra.mxu0 %v229_v14  ;;  %v359_v19 = vpop.permute.xlu1 %358 }
  0x90   : > { %588 = vmatprep.subr.bf16.mxu0 %v665_v0 }
  0x92   : > { %v357_v20 = vpop.permute.xlu0 %356 }
  0x93   : > { %589 = vmatpush3.bf16.msra.mxu0 %v227_v15  ;;  %v355_v21 = vpop.permute.xlu1 %354 }
  0x94   : > { %590 = vmatprep.subr.bf16.mxu0 %v665_v0 }
  0x96   : > { %v353_v22 = vpop.permute.xlu0 %352 }
  0x97   : > { %591 = vmatpush3.bf16.msra.mxu0 %v225_v16  ;;  %v351_v23 = vpop.permute.xlu1 %350 }
  0x98   : > { %612 = vmatprep.subr.bf16.mxu0 %v665_v0 }
  0x9a   : > { %593 = vmatmul.mubr.msk.bf16.vlgmr.msra.gmra.mxu0 %vm242_vm1, %v650_v17 }
  0x9b   : > { %613 = vmatpush3.bf16.msra.mxu0 %v361_v18  ;;  %624 = vmatprep.mubr.msk.bf16.mxu0 %vm667_vm0, %v665_v0 }
  0x9c   : > { %614 = vmatprep.subr.bf16.mxu0 %v665_v0 }
  0x9f   : > { %615 = vmatpush3.bf16.msra.mxu0 %v359_v19 }
  0xa0   : > { %616 = vmatprep.subr.bf16.mxu0 %v665_v0 }
  0xa3   : > { %617 = vmatpush3.bf16.msra.mxu0 %v357_v20  ;;  %v419_v35 = vpop.permute.xlu0 %418 }
  0xa4   : > { %618 = vmatprep.subr.bf16.mxu0 %v665_v0  ;;  %v424_v41 = vpop.permute.xlu1 %423 }
  0xa7   : > { %619 = vmatpush3.bf16.msra.mxu0 %v355_v21 }
  0xa8   : > { %620 = vmatprep.subr.bf16.mxu0 %v665_v0 }
  0xab   : > { %621 = vmatpush3.bf16.msra.mxu0 %v353_v22 }
  0xac   : > { %622 = vmatprep.subr.bf16.mxu0 %v665_v0 }
  0xaf   : > { %623 = vmatpush3.bf16.msra.mxu0 %v351_v23 }
  0xb2   : > { %625 = vmatmul.mubr.msk.bf16.vlgmr.msra.gmra.mxu0 %vm242_vm1, %v652_v24 }
  0xe7   : > { %v335_v25 = vpop.f32.mrf.mxu1 }
  0xe9   : > { %v610_v26 = vpop.f32.mrf.mxu1 }
  0xeb   : > { %v338_v27 = vpop.f32.mrf.mxu1 }
  0xed   : > { %v611_v28 = vpop.f32.mrf.mxu1 }
 0x15a   : > { %v280_v29 = vpop.f32.mrf.mxu0 }
 0x15b   : > { %v336_v33 = vadd.f32 %v335_v25, %v280_v29 }
 0x15c   : > { %v594_v30 = vpop.f32.mrf.mxu0 }
 0x15e   : > { %v283_v31 = vpop.f32.mrf.mxu0 }
 0x15f   : > { %v339_v38 = vadd.f32 %v338_v27, %v283_v31 }
 0x160   : > { %v595_v32 = vpop.f32.mrf.mxu0 }
 0x172   : > { %v405_v34 = vpop.f32.mrf.mxu0 }
 0x173   : > { %v412_v36 = vadd.f32 %v405_v34, %v336_v33 }
 0x174   : > { %v626_v37 = vpop.f32.mrf.mxu0 }
 0x175   : > { %v426_v39 = vadd.f32 %v419_v35, %v412_v36 }
 0x176   : > { %v408_v40 = vpop.f32.mrf.mxu0 }
 0x177   : > { %v413_v42 = vadd.f32 %v408_v40, %v339_v38  ;;  %v429_v43 = vsel %vm428_vm2, %v426_v39, 0.0 }
 0x178   : > { %v627_v44 = vpop.f32.mrf.mxu0  ;;  %430 = vadd.xlane.f32.xlu1 %v429_v43 }
 0x179   : > { %v427_v45 = vadd.f32 %v424_v41, %v413_v42 }
 0x17b   : > { %v432_v46 = vsel %vm428_vm2, %v427_v45, 0.0 }
 0x17c   : > { %433 = vadd.xlane.f32.xlu0 %v432_v46 }
 0x201   : > { %v431_v47 = vpop.xlane.xlu1 %430 }
 0x202   : > { %v436_v48 = vmul.f32 0.015625, %v431_v47 }
 0x204   : > { %v438_v49 = vsub.f32 %v426_v39, %v436_v48 }
 0x205   : > { %v434_v50 = vpop.xlane.xlu0 %433 }
 0x206   : > { %v437_v51 = vmul.f32 0.015625, %v434_v50  ;;  %v440_v52 = vmul.f32 %v438_v49, %v438_v49 }
 0x208   : > { %v439_v53 = vsub.f32 %v427_v45, %v437_v51  ;;  %v442_v54 = vsel %vm428_vm2, %v440_v52, 0.0 }
 0x209   : > { %443 = vadd.xlane.f32.xlu0 %v442_v54 }
 0x20a   : > { %v441_v55 = vmul.f32 %v439_v53, %v439_v53 }
 0x20c   : > { %v445_v56 = vsel %vm428_vm2, %v441_v55, 0.0 }
 0x20d   : > { %446 = vadd.xlane.f32.xlu1 %v445_v56 }
 0x292   : > { %v444_v57 = vpop.xlane.xlu0 %443 }
 0x293   : > { %v448_v58 = vmul.f32 0.015625, %v444_v57 }
 0x295   : > { %v450_v59 = vadd.f32 1e-05, %v448_v58 }
 0x296   : > { %v447_v60 = vpop.xlane.xlu1 %446 }
 0x297   : > { %653 = vrsqrt.f32 %v450_v59  ;;  %v449_v61 = vmul.f32 0.015625, %v447_v60 }
 0x299   : > { %v451_v62 = vadd.f32 1e-05, %v449_v61 }
 0x29b   : > { %655 = vrsqrt.f32 %v451_v62 }
 0x2a4   : > { %v654_v63 = vpop.eup %653 }
 0x2a5   : > { %v454_v0 = vmul.f32 %v654_v63, %v438_v49 }
 0x2a7   : > { %vm456_vm3 = vcmp.ge.f32.partialorder %v454_v0, 0.0  ;;  %v458_v1 = vmul.f32 0.01, %v454_v0 }
 0x2a8   : > { %v656_v2 = vpop.eup %655 }
 0x2a9   : > { %v460_v3 = vsel %vm456_vm3, %v454_v0, %v458_v1  ;;  %v455_v4 = vmul.f32 %v656_v2, %v439_v53 }
 0x2aa   : > { %v557_v5 = vpack.c.bf16 %v460_v3, %v460_v3 }
 0x2ab   : > { %vm457_vm5 = vcmp.ge.f32.partialorder %v455_v4, 0.0  ;;  %v459_v6 = vmul.f32 0.01, %v455_v4 }
 0x2ac   : > { %471 = vst.msk [vmem:[%s170_s6] sm:$0xf] %vm470_vm4, %v557_v5 }
 0x2ad   : > { %v461_v7 = vsel %vm457_vm5, %v455_v4, %v459_v6 }
 0x2ae   : > { %v558_v8 = vpack.c.bf16 %v461_v7, %v461_v7 }
 0x2b0   : > { %472 = vst.msk [vmem:[%s170_s6 + $0x4] sm:$0xf] %vm470_vm4, %v558_v8 }
 0x2b1 PF: > { %s13_s12 = sadd.s32 1, %s663_s12  }
 0x2b2   : > { %p10_p4 = scmp.ge.s32.totalorder %s13_s12, 4  }
 0x2b4   :  { %12 = sbr.rel (!%p10_p4) target bundleno = 1 (0x1), region = 64 }

// kernel: st_d_forward.9
= control target key start
LH: loop header
LB: loop body
LE: loop exit
PB: predicated region body
PF: predicated region fallthrough
CT: control target
= control target key end

     0   :  { %s602_s12 = smov 0   ;;  %s650_s0 = inlined_call_operand.vmem [shape: bf16[2,48,80], index: 0, kind: input, shape index: {}]   ;;  %s651_s1 = inlined_call_operand.vmem [shape: bf16[3,16,48], index: 1, kind: input, shape index: {}]   ;;  %s652_s2 = inlined_call_operand.vmem [shape: f32[16,1], index: 2, kind: input, shape index: {}]   ;;  %s653_s3 = inlined_call_operand.vmem [shape: f32[2,16,64], index: 3, kind: output, shape index: {}]  }
   0x1 LB: > { %s477_s13 = sadd.s32 4294967295, %s575_s12   ;;  %p481_p0 = scmp.ge.s32.totalorder %s575_s12, 1  ;;  %s575_s12 = sphi %s602_s12, %s13_s12  }
   0x2   : > { %p137_p1 = scmp.lt.s32.totalorder %s575_s12, 3 }
   0x4   : > { %p138_p2 = pnand %p481_p0, %p137_p1 }
   0x5   : > { %p161_p3 = scmp.lt.s32.totalorder (!%p138_p2), %s477_s13, 1  ;;  %s579_s18 = smov (!%p138_p2), 120  }
   0x6   : > { %141 = sbr.rel (%p138_p2) target bundleno = 663 (0x297), region = 32  ;;  %s580_s19 = smov (!%p138_p2), 112  }
   0xb   : > { %v577_v0 = vmov 0.0   ;;  %s655_s13 = smov (!%p161_p3, %s477_s13), 1  ;;  %vm578_vm0 = vmmov 0   ;;  %v563_v4 = vld [vmem:[%s651_s1] sm:$0xff]   ;;  %vm212_vm1 = vcmask 392192   ;;  %v581_v6 = vmov 0  }
   0xc   : > { %513 = vmatprep.subr.bf16.mxu0 %v577_v0  ;;  %523 = vmatprep.subr.bf16.mxu1 %v577_v0  ;;  %s543_s14 = smul.u32 24, %s655_s13  ;;  %v372_v5 = vld [vmem:[%s652_s2] sm:$0xff]  ;;  %v373_v7 = vld [vmem:[%s652_s2 + $0x8] sm:$0xff]  ;;  %v564_v15 = vld [vmem:[%s651_s1 + $0x10] sm:$0xff]   ;;  %vm386_vm2 = vcmask 523264   ;;  %s500_s30 = sshll.u32 %s655_s13, 4 }
   0xd   : > { %519 = vmatprep.mubr.msk.bf16.mxu0 %vm578_vm0, %v577_v0  ;;  %529 = vmatprep.mubr.msk.bf16.mxu1 %vm578_vm0, %v577_v0  ;;  %v562_v11 = vld [vmem:[%s651_s1 + $0x8] sm:$0xff]   ;;  %s170_s6 = scalar_lea.vmem %s653_s3, %s500_s30 }
   0xe   : > { %s165_s17 = scalar_lea.vmem %s650_s0, %s543_s14  ;;  %557 = vset.pattern.permute.xlu0 %v581_v6  ;;  %558 = vset.pattern.permute.xlu1 %v581_v6 }
   0xf   : > { %v559_v1 = vld [vmem:[%s165_s17 + $0x10] sm:$0xff]   ;;  %v560_v2 = vld [vmem:[%s165_s17 + $0x8] sm:$0xff]   ;;  %v561_v3 = vld [vmem:[%s165_s17] sm:$0xff]  }
  0x10   : > { %207 = vrot.lane.b32.xlu0 %v559_v1, %s579_s18  ;;  %524 = vmatpush3.bf16.msra.mxu1 %v559_v1 }
  0x11   : > { %525 = vmatprep.subr.bf16.mxu1 %v577_v0  ;;  %203 = vrot.lane.b32.xlu1 %v561_v3, %s579_s18 }
  0x14   : > { %205 = vrot.lane.b32.xlu0 %v560_v2, %s579_s18  ;;  %526 = vmatpush3.bf16.msra.mxu1 %v560_v2 }
  0x15   : > { %527 = vmatprep.subr.bf16.mxu1 %v577_v0  ;;  %321 = vrot.lane.b32.xlu1 %v559_v1, %s580_s19 }
  0x18   : > { %319 = vrot.lane.b32.xlu0 %v560_v2, %s580_s19  ;;  %528 = vmatpush3.bf16.msra.mxu1 %v561_v3 }
  0x19   : > { %317 = vrot.lane.b32.xlu1 %v561_v3, %s580_s19 }
  0x1b   : > { %530 = vmatmul.mubr.msk.bf16.vlgmr.msra.gmra.mxu1 %vm212_vm1, %v563_v4 }
  0x1c   : > { %376 = vperm.xlu0 %557, %v372_v5  }
  0x1d   : > { %381 = vperm.xlu1 %558, %v373_v7  }
  0x82   : > { %v208_v8 = vpop.permute.xlu0 %207 }
  0x83   : > { %514 = vmatpush3.bf16.msra.mxu0 %v208_v8  ;;  %v204_v10 = vpop.permute.xlu1 %203 }
  0x84   : > { %515 = vmatprep.subr.bf16.mxu0 %v577_v0 }
  0x86   : > { %v206_v9 = vpop.permute.xlu0 %205 }
  0x87   : > { %516 = vmatpush3.bf16.msra.mxu0 %v206_v9  ;;  %v322_v12 = vpop.permute.xlu1 %321 }
  0x88   : > { %517 = vmatprep.subr.bf16.mxu0 %v577_v0 }
  0x8a   : > { %v320_v13 = vpop.permute.xlu0 %319 }
  0x8b   : > { %518 = vmatpush3.bf16.msra.mxu0 %v204_v10  ;;  %v318_v14 = vpop.permute.xlu1 %317 }
  0x8c   : > { %533 = vmatprep.subr.bf16.mxu0 %v577_v0 }
  0x8e   : > { %520 = vmatmul.mubr.msk.bf16.vlgmr.msra.gmra.mxu0 %vm212_vm1, %v562_v11 }
  0x8f   : > { %534 = vmatpush3.bf16.msra.mxu0 %v322_v12  ;;  %539 = vmatprep.mubr.msk.bf16.mxu0 %vm578_vm0, %v577_v0 }
  0x90   : > { %535 = vmatprep.subr.bf16.mxu0 %v577_v0 }
  0x93   : > { %536 = vmatpush3.bf16.msra.mxu0 %v320_v13 }
  0x94   : > { %537 = vmatprep.subr.bf16.mxu0 %v577_v0 }
  0x97   : > { %538 = vmatpush3.bf16.msra.mxu0 %v318_v14  ;;  %v377_v26 = vpop.permute.xlu0 %376 }
  0x98   : > { %v382_v32 = vpop.permute.xlu1 %381 }
  0x9a   : > { %540 = vmatmul.mubr.msk.bf16.vlgmr.msra.gmra.mxu0 %vm212_vm1, %v564_v15 }
  0xdb   : > { %v302_v16 = vpop.f32.mrf.mxu1 }
  0xdd   : > { %v531_v17 = vpop.f32.mrf.mxu1 }
  0xdf   : > { %v305_v18 = vpop.f32.mrf.mxu1 }
  0xe1   : > { %v532_v19 = vpop.f32.mrf.mxu1 }
 0x14e   : > { %v250_v20 = vpop.f32.mrf.mxu0 }
 0x14f   : > { %v303_v24 = vadd.f32 %v302_v16, %v250_v20 }
 0x150   : > { %v521_v21 = vpop.f32.mrf.mxu0 }
 0x152   : > { %v253_v22 = vpop.f32.mrf.mxu0 }
 0x153   : > { %v306_v29 = vadd.f32 %v305_v18, %v253_v22 }
 0x154   : > { %v522_v23 = vpop.f32.mrf.mxu0 }
 0x15a   : > { %v363_v25 = vpop.f32.mrf.mxu0 }
 0x15b   : > { %v370_v27 = vadd.f32 %v363_v25, %v303_v24 }
 0x15c   : > { %v541_v28 = vpop.f32.mrf.mxu0 }
 0x15d   : > { %v384_v30 = vadd.f32 %v377_v26, %v370_v27 }
 0x15e   : > { %v366_v31 = vpop.f32.mrf.mxu0 }
 0x15f   : > { %v371_v33 = vadd.f32 %v366_v31, %v306_v29  ;;  %v387_v34 = vsel %vm386_vm2, %v384_v30, 0.0 }
 0x160   : > { %v542_v35 = vpop.f32.mrf.mxu0  ;;  %388 = vadd.xlane.f32.xlu1 %v387_v34 }
 0x161   : > { %v385_v36 = vadd.f32 %v382_v32, %v371_v33 }
 0x163   : > { %v390_v37 = vsel %vm386_vm2, %v385_v36, 0.0 }
 0x164   : > { %391 = vadd.xlane.f32.xlu0 %v390_v37 }
 0x1e9   : > { %v389_v38 = vpop.xlane.xlu1 %388 }
 0x1ea   : > { %v394_v39 = vmul.f32 0.015625, %v389_v38 }
 0x1ec   : > { %v396_v40 = vsub.f32 %v384_v30, %v394_v39 }
 0x1ed   : > { %v392_v41 = vpop.xlane.xlu0 %391 }
 0x1ee   : > { %v395_v42 = vmul.f32 0.015625, %v392_v41  ;;  %v398_v43 = vmul.f32 %v396_v40, %v396_v40 }
 0x1f0   : > { %v397_v44 = vsub.f32 %v385_v36, %v395_v42  ;;  %v400_v45 = vsel %vm386_vm2, %v398_v43, 0.0 }
 0x1f1   : > { %401 = vadd.xlane.f32.xlu0 %v400_v45 }
 0x1f2   : > { %v399_v46 = vmul.f32 %v397_v44, %v397_v44 }
 0x1f4   : > { %v403_v47 = vsel %vm386_vm2, %v399_v46, 0.0 }
 0x1f5   : > { %404 = vadd.xlane.f32.xlu1 %v403_v47 }
 0x27a   : > { %v402_v48 = vpop.xlane.xlu0 %401 }
 0x27b   : > { %v406_v49 = vmul.f32 0.015625, %v402_v48 }
 0x27d   : > { %v408_v50 = vadd.f32 1e-05, %v406_v49 }
 0x27e   : > { %v405_v51 = vpop.xlane.xlu1 %404 }
 0x27f   : > { %565 = vrsqrt.f32 %v408_v50  ;;  %v407_v52 = vmul.f32 0.015625, %v405_v51 }
 0x281   : > { %v409_v53 = vadd.f32 1e-05, %v407_v52 }
 0x283   : > { %567 = vrsqrt.f32 %v409_v53 }
 0x28c   : > { %v566_v54 = vpop.eup %565 }
 0x28d   : > { %v412_v55 = vmul.f32 %v566_v54, %v396_v40 }
 0x28f   : > { %vm414_vm3 = vcmp.ge.f32.partialorder %v412_v55, 0.0  ;;  %v416_v56 = vmul.f32 0.01, %v412_v55 }
 0x290   : > { %v568_v57 = vpop.eup %567 }
 0x291   : > { %v418_v58 = vsel %vm414_vm3, %v412_v55, %v416_v56  ;;  %v413_v59 = vmul.f32 %v568_v57, %v397_v44 }
 0x292   : > { %420 = vst.msk [vmem:[%s170_s6] sm:$0xff] %vm386_vm2, %v418_v58 }
 0x293   : > { %vm415_vm4 = vcmp.ge.f32.partialorder %v413_v59, 0.0  ;;  %v417_v60 = vmul.f32 0.01, %v413_v59 }
 0x295   : > { %v419_v61 = vsel %vm415_vm4, %v413_v59, %v417_v60 }
 0x296   : > { %421 = vst.msk [vmem:[%s170_s6 + $0x8] sm:$0xff] %vm386_vm2, %v419_v61 }
 0x297 PF: > { %s13_s12 = sadd.s32 1, %s575_s12  }
 0x298   : > { %p10_p4 = scmp.ge.s32.totalorder %s13_s12, 4  }
 0x29a   :  { %12 = sbr.rel (!%p10_p4) target bundleno = 1 (0x1), region = 64 }

// kernel: st_d_forward.10
= control target key start
LH: loop header
LB: loop body
LE: loop exit
PB: predicated region body
PF: predicated region fallthrough
CT: control target
= control target key end

     0   :  { %s428_s12 = smov 0   ;;  %s469_s0 = inlined_call_operand.vmem [shape: bf16[2,16,64], index: 0, kind: input, shape index: {}]   ;;  %s470_s1 = inlined_call_operand.vmem [shape: bf16[32,16], index: 1, kind: input, shape index: {}]   ;;  %s471_s2 = inlined_call_operand.vmem [shape: f32[32,1], index: 2, kind: input, shape index: {}]   ;;  %s472_s3 = inlined_call_operand.vmem [shape: bf16[2,32,64], index: 3, kind: output, shape index: {}]  }
   0x1 LB: > { %s350_s13 = sadd.s32 4294967295, %s405_s12   ;;  %p354_p0 = scmp.ge.s32.totalorder %s405_s12, 1  ;;  %s405_s12 = sphi %s428_s12, %s13_s12  }
   0x2   : > { %p137_p1 = scmp.lt.s32.totalorder %s405_s12, 3 }
   0x4   : > { %p138_p2 = pnand %p354_p0, %p137_p1 }
   0x5   : > { %p161_p3 = scmp.lt.s32.totalorder (!%p138_p2), %s350_s13, 1 }
   0x6   : > { %141 = sbr.rel (%p138_p2) target bundleno = 223 (0xdf), region = 32 }
   0xb   : > { %v397_v0 = vld [vmem:[%s470_s1] sm:$0xff]   ;;  %vm218_vm0 = vcmask 130048   ;;  %s474_s13 = smov (!%p161_p3, %s350_s13), 1  ;;  %v180_v1 = vld [vmem:[%s471_s2 + $0x10] sm:$0xff]  ;;  %v407_v3 = vmov 0   ;;  %v181_v4 = vld [vmem:[%s471_s2 + $0x18] sm:$0xff] }
   0xc   : > { %381 = vmatprep.mubr.msk.bf16.mxu0 %vm218_vm0, %v397_v0  ;;  %v178_v2 = vld [vmem:[%s471_s2] sm:$0xff]  ;;  %395 = vset.pattern.permute.xlu1 %v407_v3  ;;  %s370_s20 = sshll.u32 %s474_s13, 3  ;;  %v179_v5 = vld [vmem:[%s471_s2 + $0x8] sm:$0xff]  ;;  %s371_s30 = sshll.u32 %s474_s13, 4  ;;  %vm290_vm1 = vcmask 519168  }
   0xd   : > { %394 = vset.pattern.permute.xlu0 %v407_v3  ;;  %194 = vperm.xlu1 %395, %v180_v1   ;;  %s165_s23 = scalar_lea.vmem %s469_s0, %s370_s20  ;;  %v398_v7 = vld [vmem:[%s470_s1 + $0x8] sm:$0xff]   ;;  %s170_s6 = scalar_lea.vmem %s472_s3, %s371_s30 }
   0xe   : > { %184 = vperm.xlu0 %394, %v178_v2   ;;  %v396_v6 = vld [vmem:[%s165_s23] sm:$0xff]  }
   0xf   : > { %379 = vmatprep.subr.bf16.mxu0 %v396_v6 }
  0x10   : > { %380 = vmatpush3.bf16.msra.mxu0 %v396_v6 }
  0x11   : > { %199 = vperm.xlu1 %395, %v181_v4  }
  0x12   : > { %189 = vperm.xlu0 %394, %v179_v5  }
  0x13   : > { %382 = vmatmul.mubr.msk.bf16.vlgmr.msra.gmra.mxu0 %vm218_vm0, %v398_v7 }
  0x88   : > { %v195_v8 = vpop.permute.xlu1 %194 }
  0x89   : > { %v185_v9 = vpop.permute.xlu0 %184 }
  0x8c   : > { %v200_v15 = vpop.permute.xlu1 %199 }
  0x8d   : > { %v190_v19 = vpop.permute.xlu0 %189 }
  0xd3   : > { %v383_v10 = vpop.f32.mrf.mxu0 }
  0xd4   : > { %v268_v11 = vadd.f32 %v383_v10, %v195_v8 }
  0xd5   : > { %v259_v12 = vpop.f32.mrf.mxu0 }
  0xd6   : > { %v374_v13 = vpack.c.bf16 %v268_v11, %v268_v11  ;;  %v260_v14 = vadd.f32 %v259_v12, %v185_v9 }
  0xd7   : > { %v384_v16 = vpop.f32.mrf.mxu0 }
  0xd8   : > { %293 = vst.msk [vmem:[%s170_s6 + $0x8] sm:$0xf] %vm290_vm1, %v374_v13  ;;  %v372_v17 = vpack.c.bf16 %v260_v14, %v260_v14  ;;  %v271_v18 = vadd.f32 %v384_v16, %v200_v15 }
  0xd9   : > { %v262_v20 = vpop.f32.mrf.mxu0 }
  0xda   : > { %291 = vst.msk [vmem:[%s170_s6] sm:$0xf] %vm290_vm1, %v372_v17  ;;  %v375_v21 = vpack.c.bf16 %v271_v18, %v271_v18  ;;  %v263_v22 = vadd.f32 %v262_v20, %v190_v19 }
  0xdc   : > { %294 = vst.msk [vmem:[%s170_s6 + $0xc] sm:$0xf] %vm290_vm1, %v375_v21  ;;  %v373_v23 = vpack.c.bf16 %v263_v22, %v263_v22 }
  0xde   : > { %292 = vst.msk [vmem:[%s170_s6 + $0x4] sm:$0xf] %vm290_vm1, %v373_v23 }
  0xdf PF: > { %s13_s12 = sadd.s32 1, %s405_s12  }
  0xe0   : > { %p10_p4 = scmp.ge.s32.totalorder %s13_s12, 4  }
  0xe2   :  { %12 = sbr.rel (!%p10_p4) target bundleno = 1 (0x1), region = 62 }

// kernel: st_d_forward.11
= control target key start
LH: loop header
LB: loop body
LE: loop exit
PB: predicated region body
PF: predicated region fallthrough
CT: control target
= control target key end

     0   :  { %s611_s12 = smov 0   ;;  %s659_s0 = inlined_call_operand.vmem [shape: bf16[2,48,288], index: 0, kind: input, shape index: {}]   ;;  %s660_s1 = inlined_call_operand.vmem [shape: bf16[3,8,48], index: 1, kind: input, shape index: {}]   ;;  %s661_s2 = inlined_call_operand.vmem [shape: f32[8,1], index: 2, kind: input, shape index: {}]   ;;  %s662_s3 = inlined_call_operand.vmem [shape: bf16[2,8,256], index: 3, kind: output, shape index: {}]  }
   0x1 LB: > { %s526_s13 = sadd.s32 4294967295, %s586_s12   ;;  %p530_p0 = scmp.ge.s32.totalorder %s586_s12, 1  ;;  %s586_s12 = sphi %s611_s12, %s13_s12  }
   0x2   : > { %p137_p1 = scmp.lt.s32.totalorder %s586_s12, 3 }
   0x4   : > { %p138_p2 = pnand %p530_p0, %p137_p1 }
   0x5   : > { %p161_p3 = scmp.lt.s32.totalorder (!%p138_p2), %s526_s13, 1  ;;  %s588_s18 = smov (!%p138_p2), 112  }
   0x6   : > { %141 = sbr.rel (%p138_p2) target bundleno = 679 (0x2a7), region = 32  ;;  %s590_s21 = smov (!%p138_p2), 96  }
   0xb   : > { %s664_s13 = smov (!%p161_p3, %s526_s13), 1  ;;  %v589_v7 = vmov 0   ;;  %vm257_vm0 = vcmask 392192   ;;  %v184_v10 = vld [vmem:[%s660_s1] sm:$0xf]  ;;  %vm244_vm1 = vcmask 916480  }
   0xc   : > { %s553_s14 = smul.u32 72, %s664_s13  ;;  %293 = vmatprep.mubr.bf16.mxu0 %v589_v7  ;;  %343 = vmatprep.mubr.bf16.mxu1 %v589_v7  ;;  %v431_v11 = vld [vmem:[%s661_s2] sm:$0xff]  ;;  %vm372_vm2 = vcmask 785408   ;;  %v546_v43 = vld [vmem:[%s660_s1 + $0x8] sm:$0xf]  ;;  %s551_s28 = sshll.u32 %s664_s13, 3 }
   0xd   : > { %565 = vset.pattern.permute.xlu0 %v589_v7  ;;  %v534_v28 = vld [vmem:[%s660_s1 + $0x4] sm:$0xf]  ;;  %s170_s4 = scalar_lea.vmem %s662_s3, %s551_s28 }
   0xe   : > { %s165_s17 = scalar_lea.vmem %s659_s0, %s553_s14 }
   0xf   : > { %v566_v0 = vld [vmem:[%s165_s17 + $0x34] ss:$12 sps:$4 sm:$0xff]   ;;  %v568_v1 = vld [vmem:[%s165_s17 + $0x30] ss:$12 sps:$4 sm:$0xff]   ;;  %v569_v2 = vld [vmem:[%s165_s17 + $0x38] ss:$12 sps:$4 sm:$0xff]  }
  0x10   : > { %240 = vrot.lane.b32.xlu0 %v566_v0, %s588_s18  ;;  %321 = vmatprep.subr.bf16.mxu1 %v566_v0  ;;  %v570_v3 = vld [vmem:[%s165_s17 + $0x1c] ss:$12 sps:$4 sm:$0xff]   ;;  %v573_v4 = vld [vmem:[%s165_s17 + $0x18] ss:$12 sps:$4 sm:$0xff]   ;;  %v572_v5 = vld [vmem:[%s165_s17 + $0x20] ss:$12 sps:$4 sm:$0xff]  }
  0x11   : > { %238 = vrot.lane.b32.xlu1 %v568_v1, %s588_s18  ;;  %322 = vmatpush1.bf16.msra.mxu1 %v568_v1  ;;  %v575_v6 = vld [vmem:[%s165_s17 + $0x4] ss:$12 sps:$4 sm:$0xff]   ;;  %v577_v8 = vld [vmem:[%s165_s17] ss:$12 sps:$4 sm:$0xff]   ;;  %v574_v9 = vld [vmem:[%s165_s17 + $0x8] ss:$12 sps:$4 sm:$0xff]  }
  0x12   : > { %323 = vmatprep.subr.bf16.mxu1 %v570_v3 }
  0x14   : > { %242 = vrot.lane.b32.xlu0 %v569_v2, %s588_s18 }
  0x15   : > { %234 = vrot.lane.b32.xlu1 %v570_v3, %s588_s18  ;;  %324 = vmatpush1.bf16.msra.mxu1 %v573_v4 }
  0x16   : > { %325 = vmatprep.subr.bf16.mxu1 %v575_v6 }
  0x18   : > { %236 = vrot.lane.b32.xlu0 %v572_v5, %s588_s18 }
  0x19   : > { %232 = vrot.lane.b32.xlu1 %v573_v4, %s588_s18  ;;  %326 = vmatpush1.bf16.msra.mxu1 %v577_v8 }
  0x1c   : > { %228 = vrot.lane.b32.xlu0 %v575_v6, %s588_s18  ;;  %545 = vmatmul.mubr.msk.bf16.vlgmr.msra.gmra.mxu1 %vm257_vm0, %v184_v10 }
  0x1d   : > { %230 = vrot.lane.b32.xlu1 %v574_v9, %s588_s18 }
  0x20   : > { %226 = vrot.lane.b32.xlu0 %v577_v8, %s588_s18 }
  0x21   : > { %368 = vrot.lane.b32.xlu1 %v566_v0, %s590_s21 }
  0x24   : > { %370 = vrot.lane.b32.xlu0 %v569_v2, %s590_s21 }
  0x25   : > { %366 = vrot.lane.b32.xlu1 %v568_v1, %s590_s21 }
  0x28   : > { %362 = vrot.lane.b32.xlu0 %v570_v3, %s590_s21 }
  0x29   : > { %364 = vrot.lane.b32.xlu1 %v572_v5, %s590_s21 }
  0x2c   : > { %360 = vrot.lane.b32.xlu0 %v573_v4, %s590_s21 }
  0x2d   : > { %356 = vrot.lane.b32.xlu1 %v575_v6, %s590_s21 }
  0x30   : > { %358 = vrot.lane.b32.xlu0 %v574_v9, %s590_s21 }
  0x31   : > { %354 = vrot.lane.b32.xlu1 %v577_v8, %s590_s21 }
  0x34   : > { %434 = vperm.xlu0 %565, %v431_v11  }
  0x82   : > { %v241_v12 = vpop.permute.xlu0 %240 }
  0x83   : > { %v239_v13 = vpop.permute.xlu1 %238 }
  0x84   : > { %v249_v17 = vsel %vm244_vm1, %v239_v13, %v241_v12 }
  0x86   : > { %v243_v14 = vpop.permute.xlu0 %242 }
  0x87   : > { %v235_v15 = vpop.permute.xlu1 %234  ;;  %v250_v16 = vsel %vm244_vm1, %v241_v12, %v243_v14 }
  0x88   : > { %271 = vmatprep.subr.bf16.mxu0 %v250_v16 }
  0x89   : > { %272 = vmatpush1.bf16.msra.mxu0 %v249_v17 }
  0x8a   : > { %v237_v18 = vpop.permute.xlu0 %236 }
  0x8b   : > { %v233_v19 = vpop.permute.xlu1 %232  ;;  %v248_v20 = vsel %vm244_vm1, %v235_v15, %v237_v18 }
  0x8c   : > { %273 = vmatprep.subr.bf16.mxu0 %v248_v20  ;;  %v247_v21 = vsel %vm244_vm1, %v233_v19, %v235_v15 }
  0x8d   : > { %274 = vmatpush1.bf16.msra.mxu0 %v247_v21 }
  0x8e   : > { %v229_v22 = vpop.permute.xlu0 %228 }
  0x8f   : > { %v231_v23 = vpop.permute.xlu1 %230 }
  0x90   : > { %v246_v24 = vsel %vm244_vm1, %v229_v22, %v231_v23 }
  0x91   : > { %275 = vmatprep.subr.bf16.mxu0 %v246_v24 }
  0x92   : > { %v227_v25 = vpop.permute.xlu0 %226 }
  0x93   : > { %v369_v26 = vpop.permute.xlu1 %368  ;;  %v245_v27 = vsel %vm244_vm1, %v227_v25, %v229_v22 }
  0x94   : > { %276 = vmatpush1.bf16.msra.mxu0 %v245_v27 }
  0x96   : > { %v371_v29 = vpop.permute.xlu0 %370 }
  0x97   : > { %v367_v30 = vpop.permute.xlu1 %366  ;;  %544 = vmatmul.mubr.msk.bf16.vlgmr.msra.gmra.mxu0 %vm257_vm0, %v534_v28  ;;  %v378_v31 = vsel %vm372_vm2, %v369_v26, %v371_v29 }
  0x98   : > { %v377_v32 = vsel %vm372_vm2, %v367_v30, %v369_v26  ;;  %398 = vmatprep.subr.bf16.mxu0 %v378_v31  ;;  %420 = vmatprep.mubr.bf16.mxu0 %v589_v7 }
  0x99   : > { %399 = vmatpush1.bf16.msra.mxu0 %v377_v32 }
  0x9a   : > { %v363_v33 = vpop.permute.xlu0 %362 }
  0x9b   : > { %v365_v34 = vpop.permute.xlu1 %364 }
  0x9c   : > { %v376_v35 = vsel %vm372_vm2, %v363_v33, %v365_v34 }
  0x9d   : > { %400 = vmatprep.subr.bf16.mxu0 %v376_v35 }
  0x9e   : > { %v361_v36 = vpop.permute.xlu0 %360 }
  0x9f   : > { %v357_v37 = vpop.permute.xlu1 %356  ;;  %v375_v38 = vsel %vm372_vm2, %v361_v36, %v363_v33 }
  0xa0   : > { %401 = vmatpush1.bf16.msra.mxu0 %v375_v38 }
  0xa2   : > { %v359_v39 = vpop.permute.xlu0 %358 }
  0xa3   : > { %v355_v40 = vpop.permute.xlu1 %354  ;;  %v374_v41 = vsel %vm372_vm2, %v357_v37, %v359_v39 }
  0xa4   : > { %v373_v42 = vsel %vm372_vm2, %v355_v40, %v357_v37  ;;  %402 = vmatprep.subr.bf16.mxu0 %v374_v41 }
  0xa5   : > { %403 = vmatpush1.bf16.msra.mxu0 %v373_v42 }
  0xa8   : > { %547 = vmatmul.mubr.msk.bf16.vlgmr.msra.gmra.mxu0 %vm257_vm0, %v546_v43 }
  0xaf   : > { %v435_v57 = vpop.permute.xlu0 %434 }
  0xdc   : > { %v345_v44 = vpop.f32.mrf.mxu1 }
  0xde   : > { %v347_v45 = vpop.f32.mrf.mxu1 }
  0xe0   : > { %v349_v46 = vpop.f32.mrf.mxu1 }
  0xe2   : > { %v350_v47 = vpop.f32.mrf.mxu1 }
 0x157   : > { %v295_v48 = vpop.f32.mrf.mxu0 }
 0x158   : > { %v346_v52 = vadd.f32 %v345_v44, %v295_v48 }
 0x159   : > { %v297_v49 = vpop.f32.mrf.mxu0 }
 0x15a   : > { %v348_v54 = vadd.f32 %v347_v45, %v297_v49 }
 0x15b   : > { %v299_v50 = vpop.f32.mrf.mxu0 }
 0x15d   : > { %v300_v51 = vpop.f32.mrf.mxu0 }
 0x168   : > { %v422_v53 = vpop.f32.mrf.mxu0 }
 0x169   : > { %v429_v55 = vadd.f32 %v422_v53, %v346_v52 }
 0x16a   : > { %v424_v56 = vpop.f32.mrf.mxu0 }
 0x16b   : > { %v430_v58 = vadd.f32 %v424_v56, %v348_v54  ;;  %v437_v60 = vadd.f32 %v435_v57, %v429_v55 }
 0x16c   : > { %v426_v59 = vpop.f32.mrf.mxu0 }
 0x16d   : > { %v438_v61 = vadd.f32 %v435_v57, %v430_v58 }
 0x16e   : > { %v427_v62 = vpop.f32.mrf.mxu0 }
 0x16f   : > { %v439_v63 = vadd.f32 %v438_v61, %v437_v60 }
 0x171   : > { %440 = vadd.xlane.f32.xlu1 %v439_v63 }
 0x1fa   : > { %v441_v0 = vpop.xlane.xlu1 %440 }
 0x1fb   : > { %v443_v1 = vmul.f32 0.00390625, %v441_v0 }
 0x1fd   : > { %v444_v2 = vsub.f32 %v437_v60, %v443_v1  ;;  %v445_v3 = vsub.f32 %v438_v61, %v443_v1 }
 0x1ff   : > { %v446_v4 = vmul.f32 %v444_v2, %v444_v2  ;;  %v447_v5 = vmul.f32 %v445_v3, %v445_v3 }
 0x201   : > { %v448_v6 = vadd.f32 %v447_v5, %v446_v4 }
 0x203   : > { %449 = vadd.xlane.f32.xlu0 %v448_v6 }
 0x28c   : > { %v450_v7 = vpop.xlane.xlu0 %449 }
 0x28d   : > { %v451_v8 = vmul.f32 0.00390625, %v450_v7 }
 0x28f   : > { %v452_v9 = vadd.f32 1e-05, %v451_v8 }
 0x291   : > { %578 = vrsqrt.f32 %v452_v9 }
 0x29e   : > { %v579_v10 = vpop.eup %578 }
 0x29f   : > { %v454_v11 = vmul.f32 %v579_v10, %v444_v2  ;;  %v455_v12 = vmul.f32 %v579_v10, %v445_v3 }
 0x2a1   : > { %vm456_vm3 = vcmp.ge.f32.partialorder %v454_v11, 0.0  ;;  %vm457_vm4 = vcmp.ge.f32.partialorder %v455_v12, 0.0  ;;  %v458_v13 = vmul.f32 0.01, %v454_v11  ;;  %v459_v14 = vmul.f32 0.01, %v455_v12 }
 0x2a3   : > { %v460_v15 = vsel %vm456_vm3, %v454_v11, %v458_v13  ;;  %v461_v16 = vsel %vm457_vm4, %v455_v12, %v459_v14 }
 0x2a4   : > { %v552_v17 = vpack.c.bf16 %v461_v16, %v460_v15 }
 0x2a6   : > { %470 = vst [vmem:[%s170_s4] sm:$0xff] %v552_v17 }
 0x2a7 PF: > { %s13_s12 = sadd.s32 1, %s586_s12  }
 0x2a8   : > { %p10_p4 = scmp.ge.s32.totalorder %s13_s12, 4  }
 0x2aa   :  { %12 = sbr.rel (!%p10_p4) target bundleno = 1 (0x1), region = 64 }

// kernel: st_d_forward.12
= control target key start
LH: loop header
LB: loop body
LE: loop exit
PB: predicated region body
PF: predicated region fallthrough
CT: control target
= control target key end

     0   :  { %s564_s12 = smov 0   ;;  %s606_s0 = inlined_call_operand.vmem [shape: bf16[2,24,288], index: 0, kind: input, shape index: {}]   ;;  %s607_s1 = inlined_call_operand.vmem [shape: bf16[3,8,24], index: 1, kind: input, shape index: {}]   ;;  %s608_s2 = inlined_call_operand.vmem [shape: f32[8,1], index: 2, kind: input, shape index: {}]   ;;  %s609_s3 = inlined_call_operand.vmem [shape: f32[2,8,256], index: 3, kind: output, shape index: {}]  }
   0x1 LB: > { %s486_s13 = sadd.s32 4294967295, %s539_s12   ;;  %p490_p0 = scmp.ge.s32.totalorder %s539_s12, 1  ;;  %s539_s12 = sphi %s564_s12, %s13_s12  }
   0x2   : > { %p137_p1 = scmp.lt.s32.totalorder %s539_s12, 3 }
   0x4   : > { %p138_p2 = pnand %p490_p0, %p137_p1 }
   0x5   : > { %p161_p3 = scmp.lt.s32.totalorder (!%p138_p2), %s486_s13, 1  ;;  %s541_s18 = smov (!%p138_p2), 112  }
   0x6   : > { %141 = sbr.rel (%p138_p2) target bundleno = 667 (0x29b), region = 32  ;;  %s543_s21 = smov (!%p138_p2), 96  }
   0xb   : > { %s611_s13 = smov (!%p161_p3, %s486_s13), 1  ;;  %vm225_vm0 = vcmask 1043456   ;;  %v542_v5 = vmov 0   ;;  %v178_v9 = vld [vmem:[%s607_s1] sm:$0xf]  ;;  %vm221_vm1 = vcmask 195584  }
   0xc   : > { %s511_s14 = smul.u32 36, %s611_s13  ;;  %264 = vmatprep.mubr.bf16.mxu0 %v542_v5  ;;  %316 = vmatprep.mubr.bf16.mxu1 %v542_v5  ;;  %v398_v10 = vld [vmem:[%s608_s2] sm:$0xff]  ;;  %vm214_vm2 = vcmask 916480   ;;  %vm339_vm3 = vcmask 785408   ;;  %v505_v34 = vld [vmem:[%s607_s1 + $0x8] sm:$0xf] }
   0xd   : > { %523 = vset.pattern.permute.xlu0 %v542_v5  ;;  %v494_v23 = vld [vmem:[%s607_s1 + $0x4] sm:$0xf]  ;;  %s510_s28 = sshll.u32 %s611_s13, 4 }
   0xe   : > { %s165_s17 = scalar_lea.vmem %s606_s0, %s511_s14  ;;  %s170_s4 = scalar_lea.vmem %s609_s3, %s510_s28 }
   0xf   : > { %v524_v0 = vld [vmem:[%s165_s17 + $0x20] ss:$0 sps:$4 sm:$0xff]   ;;  %v176_v1 = vld [vmem:[%s165_s17 + $0x18] sm:$0xff]  ;;  %v527_v4 = vld [vmem:[%s165_s17 + $0x4] ss:$12 sps:$4 sm:$0xff]  }
  0x10   : > { %v498_v2 = vcombine.low %v176_v1, %v176_v1  ;;  %v499_v3 = vcombine.high %v176_v1, %v176_v1  ;;  %212 = vrot.lane.b32.xlu1 %v524_v0, %s541_s18  ;;  %v530_v7 = vld [vmem:[%s165_s17] ss:$12 sps:$4 sm:$0xff]   ;;  %v529_v8 = vld [vmem:[%s165_s17 + $0x8] ss:$12 sps:$4 sm:$0xff]  }
  0x12   : > { %208 = vrot.lane.b32.xlu0 %v498_v2, %s541_s18  ;;  %503 = vmatprep.subr.msk.bf16.mxu1 %vm225_vm0, %v499_v3  ;;  %v279_v6 = vsel %vm225_vm0, %v498_v2, 0 }
  0x13   : > { %297 = vmatpush1.bf16.msra.mxu1 %v279_v6 }
  0x14   : > { %298 = vmatprep.subr.bf16.mxu1 %v527_v4  ;;  %204 = vrot.lane.b32.xlu1 %v527_v4, %s541_s18 }
  0x16   : > { %210 = vrot.lane.b32.xlu0 %v499_v3, %s541_s18 }
  0x17   : > { %299 = vmatpush1.bf16.msra.mxu1 %v530_v7 }
  0x18   : > { %202 = vrot.lane.b32.xlu1 %v530_v7, %s541_s18 }
  0x1a   : > { %206 = vrot.lane.b32.xlu0 %v529_v8, %s541_s18  ;;  %504 = vmatmul.mubr.msk.bf16.vlgmr.msra.gmra.mxu1 %vm221_vm1, %v178_v9 }
  0x1c   : > { %335 = vrot.lane.b32.xlu1 %v499_v3, %s543_s21 }
  0x1e   : > { %333 = vrot.lane.b32.xlu0 %v498_v2, %s543_s21 }
  0x20   : > { %329 = vrot.lane.b32.xlu1 %v527_v4, %s543_s21 }
  0x22   : > { %337 = vrot.lane.b32.xlu0 %v524_v0, %s543_s21 }
  0x24   : > { %327 = vrot.lane.b32.xlu1 %v530_v7, %s543_s21 }
  0x26   : > { %331 = vrot.lane.b32.xlu0 %v529_v8, %s543_s21 }
  0x2a   : > { %401 = vperm.xlu0 %523, %v398_v10  }
  0x82   : > { %v213_v11 = vpop.permute.xlu1 %212 }
  0x84   : > { %v209_v12 = vpop.permute.xlu0 %208 }
  0x86   : > { %v205_v13 = vpop.permute.xlu1 %204 }
  0x88   : > { %v211_v14 = vpop.permute.xlu0 %210 }
  0x89   : > { %v218_v15 = vsel %vm214_vm2, %v211_v14, %v213_v11  ;;  %v217_v16 = vsel %vm214_vm2, %v209_v12, %v211_v14 }
  0x8a   : > { %501 = vmatprep.subr.msk.bf16.mxu0 %vm225_vm0, %v218_v15  ;;  %v227_v17 = vsel %vm225_vm0, %v217_v16, 0  ;;  %v203_v18 = vpop.permute.xlu1 %202 }
  0x8b   : > { %245 = vmatpush1.bf16.msra.mxu0 %v227_v17  ;;  %v215_v21 = vsel %vm214_vm2, %v203_v18, %v205_v13 }
  0x8c   : > { %v207_v19 = vpop.permute.xlu0 %206 }
  0x8d   : > { %v216_v20 = vsel %vm214_vm2, %v205_v13, %v207_v19 }
  0x8e   : > { %246 = vmatprep.subr.bf16.mxu0 %v216_v20  ;;  %v336_v22 = vpop.permute.xlu1 %335 }
  0x8f   : > { %247 = vmatpush1.bf16.msra.mxu0 %v215_v21 }
  0x90   : > { %v334_v24 = vpop.permute.xlu0 %333 }
  0x91   : > { %v342_v25 = vsel %vm339_vm3, %v334_v24, %v336_v22 }
  0x92   : > { %502 = vmatmul.mubr.msk.bf16.vlgmr.msra.gmra.mxu0 %vm221_vm1, %v494_v23  ;;  %v330_v26 = vpop.permute.xlu1 %329  ;;  %v350_v29 = vsel %vm225_vm0, %v342_v25, 0 }
  0x93   : > { %387 = vmatprep.mubr.bf16.mxu0 %v542_v5 }
  0x94   : > { %v338_v27 = vpop.permute.xlu0 %337 }
  0x95   : > { %v343_v28 = vsel %vm339_vm3, %v336_v22, %v338_v27 }
  0x96   : > { %506 = vmatprep.subr.msk.bf16.mxu0 %vm225_vm0, %v343_v28  ;;  %v328_v30 = vpop.permute.xlu1 %327 }
  0x97   : > { %368 = vmatpush1.bf16.msra.mxu0 %v350_v29  ;;  %v340_v33 = vsel %vm339_vm3, %v328_v30, %v330_v26 }
  0x98   : > { %v332_v31 = vpop.permute.xlu0 %331 }
  0x99   : > { %v341_v32 = vsel %vm339_vm3, %v330_v26, %v332_v31 }
  0x9a   : > { %369 = vmatprep.subr.bf16.mxu0 %v341_v32 }
  0x9b   : > { %370 = vmatpush1.bf16.msra.mxu0 %v340_v33 }
  0x9e   : > { %507 = vmatmul.mubr.msk.bf16.vlgmr.msra.gmra.mxu0 %vm221_vm1, %v505_v34 }
  0xa5   : > { %v402_v47 = vpop.permute.xlu0 %401 }
  0xda   : > { %v318_v35 = vpop.f32.mrf.mxu1 }
  0xdc   : > { %v320_v36 = vpop.f32.mrf.mxu1 }
  0xde   : > { %v322_v37 = vpop.f32.mrf.mxu1 }
  0xe0   : > { %v323_v38 = vpop.f32.mrf.mxu1 }
 0x152   : > { %v266_v39 = vpop.f32.mrf.mxu0 }
 0x153   : > { %v319_v43 = vadd.f32 %v318_v35, %v266_v39 }
 0x154   : > { %v268_v40 = vpop.f32.mrf.mxu0 }
 0x155   : > { %v321_v45 = vadd.f32 %v320_v36, %v268_v40 }
 0x156   : > { %v270_v41 = vpop.f32.mrf.mxu0 }
 0x158   : > { %v271_v42 = vpop.f32.mrf.mxu0 }
 0x15e   : > { %v389_v44 = vpop.f32.mrf.mxu0 }
 0x15f   : > { %v396_v46 = vadd.f32 %v389_v44, %v319_v43 }
 0x160   : > { %v391_v48 = vpop.f32.mrf.mxu0 }
 0x161   : > { %v397_v49 = vadd.f32 %v391_v48, %v321_v45  ;;  %v404_v51 = vadd.f32 %v402_v47, %v396_v46 }
 0x162   : > { %v393_v50 = vpop.f32.mrf.mxu0 }
 0x163   : > { %v405_v52 = vadd.f32 %v402_v47, %v397_v49 }
 0x164   : > { %v394_v53 = vpop.f32.mrf.mxu0 }
 0x165   : > { %v406_v54 = vadd.f32 %v405_v52, %v404_v51 }
 0x167   : > { %407 = vadd.xlane.f32.xlu1 %v406_v54 }
 0x1f0   : > { %v408_v55 = vpop.xlane.xlu1 %407 }
 0x1f1   : > { %v410_v56 = vmul.f32 0.00390625, %v408_v55 }
 0x1f3   : > { %v411_v57 = vsub.f32 %v404_v51, %v410_v56  ;;  %v412_v58 = vsub.f32 %v405_v52, %v410_v56 }
 0x1f5   : > { %v413_v59 = vmul.f32 %v411_v57, %v411_v57  ;;  %v414_v60 = vmul.f32 %v412_v58, %v412_v58 }
 0x1f7   : > { %v415_v61 = vadd.f32 %v414_v60, %v413_v59 }
 0x1f9   : > { %416 = vadd.xlane.f32.xlu0 %v415_v61 }
 0x282   : > { %v417_v62 = vpop.xlane.xlu0 %416 }
 0x283   : > { %v418_v63 = vmul.f32 0.00390625, %v417_v62 }
 0x285   : > { %v419_v0 = vadd.f32 1e-05, %v418_v63 }
 0x287   : > { %531 = vrsqrt.f32 %v419_v0 }
 0x294   : > { %v532_v1 = vpop.eup %531 }
 0x295   : > { %v421_v2 = vmul.f32 %v532_v1, %v411_v57  ;;  %v422_v3 = vmul.f32 %v532_v1, %v412_v58 }
 0x297   : > { %vm423_vm4 = vcmp.ge.f32.partialorder %v421_v2, 0.0  ;;  %vm424_vm5 = vcmp.ge.f32.partialorder %v422_v3, 0.0  ;;  %v425_v4 = vmul.f32 0.01, %v421_v2  ;;  %v426_v5 = vmul.f32 0.01, %v422_v3 }
 0x299   : > { %v427_v6 = vsel %vm423_vm4, %v421_v2, %v425_v4  ;;  %v428_v7 = vsel %vm424_vm5, %v422_v3, %v426_v5 }
 0x29a   : > { %429 = vst [vmem:[%s170_s4] sm:$0xff] %v427_v6  ;;  %430 = vst [vmem:[%s170_s4 + $0x8] sm:$0xff] %v428_v7 }
 0x29b PF: > { %s13_s12 = sadd.s32 1, %s539_s12  }
 0x29c   : > { %p10_p4 = scmp.ge.s32.totalorder %s13_s12, 4  }
 0x29e   :  { %12 = sbr.rel (!%p10_p4) target bundleno = 1 (0x1), region = 64 }

// kernel: st_d_forward.13
= control target key start
LH: loop header
LB: loop body
LE: loop exit
PB: predicated region body
PF: predicated region fallthrough
CT: control target
= control target key end

     0   :  { %s355_s12 = smov 0   ;;  %s378_s0 = inlined_call_operand.vmem [shape: bf16[2,8,256], index: 0, kind: input, shape index: {}]   ;;  %s379_s1 = inlined_call_operand.vmem [shape: bf16[3,8], index: 1, kind: input, shape index: {}]   ;;  %s380_s2 = inlined_call_operand.vmem [shape: f32[3,1], index: 2, kind: input, shape index: {}]   ;;  %s381_s3 = inlined_call_operand.vmem [shape: f32[2,3,256], index: 3, kind: output, shape index: {}]  }
   0x1 LB: > { %s297_s13 = sadd.s32 4294967295, %s332_s12   ;;  %p301_p0 = scmp.ge.s32.totalorder %s332_s12, 1  ;;  %s332_s12 = sphi %s355_s12, %s13_s12  }
   0x2   : > { %p137_p1 = scmp.lt.s32.totalorder %s332_s12, 3 }
   0x4   : > { %p138_p2 = pnand %p301_p0, %p137_p1 }
   0x5   : > { %p161_p3 = scmp.lt.s32.totalorder (!%p138_p2), %s297_s13, 1 }
   0x6   : > { %141 = sbr.rel (%p138_p2) target bundleno = 221 (0xdd), region = 32 }
   0xb   : > { %v334_v0 = vmov 0   ;;  %v174_v1 = vld [vmem:[%s380_s2] sm:$0x7]  ;;  %s383_s13 = smov (!%p161_p3, %s297_s13), 1  ;;  %vm189_vm0 = vcmask 1043456   ;;  %vm185_vm1 = vcmask 64512  }
   0xc   : > { %228 = vmatprep.mubr.bf16.mxu0 %v334_v0  ;;  %323 = vset.pattern.permute.xlu0 %v334_v0  ;;  %s312_s16 = sshll.u32 %s383_s13, 3  ;;  %v172_v6 = vld [vmem:[%s379_s1] sm:$0x3] }
   0xd   : > { %177 = vperm.xlu0 %323, %v174_v1   ;;  %s165_s19 = scalar_lea.vmem %s378_s0, %s312_s16  ;;  %s170_s24 = scalar_lea.vmem %s381_s3, %s312_s16 }
   0xe   : > { %v173_v2 = vld [vmem:[%s165_s19] sm:$0xff] }
   0xf   : > { %v307_v3 = vcombine.high %v173_v2, %v173_v2  ;;  %v306_v4 = vcombine.low %v173_v2, %v173_v2 }
  0x11   : > { %308 = vmatprep.subr.msk.bf16.mxu0 %vm189_vm0, %v307_v3  ;;  %v191_v5 = vsel %vm189_vm0, %v306_v4, 0 }
  0x12   : > { %211 = vmatpush1.bf16.msra.mxu0 %v191_v5 }
  0x15   : > { %309 = vmatmul.mubr.msk.bf16.vlgmr.msra.gmra.mxu0 %vm185_vm1, %v172_v6 }
  0x88   : > { %v178_v7 = vpop.permute.xlu0 %177 }
  0xd5   : > { %v230_v8 = vpop.f32.mrf.mxu0 }
  0xd6   : > { %v231_v10 = vadd.f32 %v230_v8, %v178_v7 }
  0xd7   : > { %v232_v9 = vpop.f32.mrf.mxu0 }
  0xd8   : > { %v233_v11 = vadd.f32 %v232_v9, %v178_v7 }
  0xd9   : > { %v234_v12 = vpop.f32.mrf.mxu0 }
  0xda   : > { %v239_v13 = vcombine.low %v231_v10, %v233_v11 }
  0xdb   : > { %v235_v14 = vpop.f32.mrf.mxu0 }
  0xdc   : > { %241 = vst [vmem:[%s170_s24] sm:$0x77] %v239_v13 }
  0xdd PF: > { %s13_s12 = sadd.s32 1, %s332_s12  }
  0xde   : > { %p10_p4 = scmp.ge.s32.totalorder %s13_s12, 4  }
  0xe0   :  { %12 = sbr.rel (!%p10_p4) target bundleno = 1 (0x1), region = 62 }

</bundles_post_ra>
